<compile_context>
chip_gen: v7x
topology: tpu7x:2x2x1
jax: 0.10.0
libtpu: 0.0.40
codegen_flags: <defaults>
</compile_context>

<pallas_src>
import jax
import jax.numpy as jnp
from jax.experimental import pallas as pl
from jax.experimental.pallas import tpu as pltpu

IN1, H1, H2, OUT = 1, 5, 100, 1      # CustomRNN(1,5), CustomRNN(5,100), Linear(100,1)
H1P, H2P = 8, 128                    # sublane/lane-aligned padded hidden sizes
TB = 8                               # batch tile (sublane-aligned)
OUTP = 128                           # lane-dense padded output width


def rnn_kernel(x_ref,                       # (TB, S)      batch-major input, f32
               wih1_ref, whh1_ref, b1_ref,  # (1,H1P) (H1P,H1P) (1,H1P)     f32, zero-padded
               wih2_ref, whh2_ref, b2_ref,  # (H1P,H2P) (H2P,H2P) bf16; (1,H2P) f32
               w3_ref, b3_ref,              # (1,H2P) (1,1)                 f32, zero-padded
               out_ref):                    # (TB, OUTP)   f32
    B, S = x_ref.shape

    # ---------------- layer 1: CustomRNN(1 -> 5), hidden padded to 8 ----------------
    wih1 = wih1_ref[...]                    # (1, H1P)
    whh1 = whh1_ref[...]                    # (H1P, H1P)
    b1 = b1_ref[...]                        # (1, H1P)
    x = x_ref[...]                          # (TB, S)

    # Fully unrolled recurrence. The recurrent 5x5 term is done on the VPU as 5
    # broadcast MACs (padded lanes of h1 are exactly 0, so k>=H1 contributes
    # nothing). The per-step input term x[:, t]*w_ih + b is independent of the
    # carried state, so the scheduler can hoist/overlap it.
    h1 = jnp.zeros((B, H1P), jnp.float32)
    h1_states = []
    for t in range(S):
        pre = b1 + x[:, t:t + 1] * wih1                     # (TB, H1P)
        for k in range(H1):
            pre = pre + h1[:, k:k + 1] * whh1[k:k + 1, :]
        h1 = jnp.tanh(pre)
        h1_states.append(h1)

    # ---------------- layer 2: CustomRNN(5 -> 100), padded to (8 -> 128) ------------
    wih2 = wih2_ref[...]                    # (H1P, H2P) bf16
    whh2 = whh2_ref[...]                    # (H2P, H2P) bf16
    b2 = b2_ref[...]                        # (1, H2P)   f32

    # Hoisted input matmul: one MXU matmul (M=S*TB, K=H1P, N=H2P) for all
    # timesteps. Pieces are 8-sublane aligned, so the concat is layout-free.
    h1_seq = jnp.concatenate(h1_states, axis=0)             # (S*TB, H1P)
    ih2_all = jnp.dot(h1_seq.astype(jnp.bfloat16), wih2,
                      preferred_element_type=jnp.float32) + b2
    ih2_all = ih2_all.reshape(S, B, H2P)                    # major-axis indexable slab

    # Fully unrolled recurrence; only the unavoidable recurrent matmul stays
    # serial. bf16 operands, f32 accumulation, f32 tanh.
    h2 = jnp.zeros((B, H2P), jnp.float32)
    for t in range(S):
        hh = jnp.dot(h2.astype(jnp.bfloat16), whh2,
                     preferred_element_type=jnp.float32)
        h2 = jnp.tanh(ih2_all[t] + hh)

    # ---------------- layer 3: Linear(100 -> 1) + ReLU on final hidden state --------
    # N=1 matmul replaced by VPU multiply + lane reduction; lane-dense store.
    y = jnp.sum(h2 * w3_ref[...], axis=-1, keepdims=True) + b3_ref[...]   # (TB, 1)
    out_ref[...] = jnp.broadcast_to(jnp.maximum(y, 0.0), out_ref.shape)


def _pad2(a, shape):
    """Zero-pad a 2-D array to `shape` (exact zeros keep padded lanes inert)."""
    out = jnp.zeros(shape, jnp.float32)
    return out.at[: a.shape[0], : a.shape[1]].set(a.astype(jnp.float32))


def prepare_params(params):
    """One-time weight prep: pad/transpose to hardware shapes, bf16-cast MXU weights."""
    return (
        _pad2(params["w_ih1"].T, (1, H1P)),                            # (1, H1P)   f32
        _pad2(params["w_hh1"].T, (H1P, H1P)),                          # (H1P,H1P)  f32
        _pad2((params["b_ih1"] + params["b_hh1"])[None, :], (1, H1P)),
        _pad2(params["w_ih2"].T, (H1P, H2P)).astype(jnp.bfloat16),     # (H1P,H2P)  bf16
        _pad2(params["w_hh2"].T, (H2P, H2P)).astype(jnp.bfloat16),     # (H2P,H2P)  bf16
        _pad2((params["b_ih2"] + params["b_hh2"])[None, :], (1, H2P)),
        _pad2(params["w3"], (1, H2P)),                                 # (1, H2P)   f32 row
        params["b3"][None, :].astype(jnp.float32),                     # (1, 1)
    )


def rnn_forward(x, prepped):
    """x: (batch, seq, 1) float32 -> (batch, 1) float32."""
    B, S, _ = x.shape
    BP = ((B + TB - 1) // TB) * TB
    # Batch-major, feature dim squeezed, batch zero-padded to a sublane multiple.
    xb = jnp.zeros((BP, S), jnp.float32).at[:B, :].set(x[..., 0].astype(jnp.float32))

    const = lambda i: (0, 0)
    out = pl.pallas_call(
        rnn_kernel,
        out_shape=jax.ShapeDtypeStruct((BP, OUTP), jnp.float32),
        grid_spec=pltpu.PrefetchScalarGridSpec(
            num_scalar_prefetch=0,
            grid=(BP // TB,),                                   # batch-parallel grid
            in_specs=[
                pl.BlockSpec((TB, S), lambda i: (i, 0)),        # x: tiled over batch
                pl.BlockSpec((1, H1P), const),                  # weights: resident
                pl.BlockSpec((H1P, H1P), const),
                pl.BlockSpec((1, H1P), const),
                pl.BlockSpec((H1P, H2P), const),
                pl.BlockSpec((H2P, H2P), const),
                pl.BlockSpec((1, H2P), const),
                pl.BlockSpec((1, H2P), const),
                pl.BlockSpec((1, 1), const),
            ],
            out_specs=pl.BlockSpec((TB, OUTP), lambda i: (i, 0)),
        ),
        compiler_params=pltpu.CompilerParams(
            dimension_semantics=("parallel",)),
    )(xb, *prepped)
    return out[:B, :OUT]


def init_params(key):
    """Deterministic init matching PyTorch shapes (uniform +-1/sqrt(fan))."""
    ks = jax.random.split(key, 11)

    def u(k, shape, fan):
        bound = 1.0 / float(fan) ** 0.5
        return jax.random.uniform(k, shape, jnp.float32, -bound, bound)

    return {
        "w_ih1": u(ks[0], (H1, IN1), H1),
        "w_hh1": u(ks[1], (H1, H1), H1),
        "b_ih1": u(ks[2], (H1,), H1),
        "b_hh1": u(ks[3], (H1,), H1),
        "w_ih2": u(ks[4], (H2, H1), H2),
        "w_hh2": u(ks[5], (H2, H2), H2),
        "b_ih2": u(ks[6], (H2,), H2),
        "b_hh2": u(ks[7], (H2,), H2),
        "w3":    u(ks[8], (OUT, H2), H2),
        "b3":    u(ks[9], (OUT,), H2),
    }


def rnn_ref(x, params):
    """Pure-JAX f32 reference of the assumed PyTorch semantics."""
    # TODO(synk): rnn.CustomRNN source not provided; assumed Elman cell returning
    # (last hidden, full hidden sequence) — verify against the real module.
    def cell(w_ih, w_hh, b_ih, b_hh, x_seq):
        B, S, _ = x_seq.shape
        H = w_ih.shape[0]
        h = jnp.zeros((B, H), jnp.float32)
        hs = []
        for t in range(S):
            h = jnp.tanh(x_seq[:, t] @ w_ih.T + b_ih + h @ w_hh.T + b_hh)
            hs.append(h)
        return h, jnp.stack(hs, axis=1)            # (out=last, hidden=sequence)

    _, hid1 = cell(params["w_ih1"], params["w_hh1"], params["b_ih1"], params["b_hh1"], x)
    out2, _ = cell(params["w_ih2"], params["w_hh2"], params["b_ih2"], params["b_hh2"], hid1)
    y = out2 @ params["w3"].T + params["b3"]
    return jnp.maximum(y, 0.0)


if __name__ == "__main__":
    key = jax.random.PRNGKey(0)
    kx, kp = jax.random.split(key)

    B, S = 2, 8
    x = jax.random.normal(kx, (B, S, IN1), jnp.float32)   # (batch, seq, in=1)
    params = init_params(kp)
    prepped = prepare_params(params)                       # one-time weight prep

    out = jax.block_until_ready(jax.jit(rnn_forward)(x, prepped))
    ref = rnn_ref(x, params)

    assert out.shape == (B, OUT), out.shape
    # Tolerance relaxed vs pure-f32: layer-2 MXU operands are bf16 (f32 accumulate).
    assert jnp.allclose(out, ref, atol=2e-2, rtol=2e-2), (out, ref)
    print("KERNEL_OK")
</pallas_src>

<mosaic_0001>
module attributes {stable_mosaic.version = 11 : i64} {
  func.func @rnn_kernel(%arg0: i32, %arg1: memref<8x8xf32, #tpu.memory_space<vmem>>, %arg2: memref<1x8xf32, #tpu.memory_space<vmem>>, %arg3: memref<8x8xf32, #tpu.memory_space<vmem>>, %arg4: memref<1x8xf32, #tpu.memory_space<vmem>>, %arg5: memref<8x128xbf16, #tpu.memory_space<vmem>>, %arg6: memref<128x128xbf16, #tpu.memory_space<vmem>>, %arg7: memref<1x128xf32, #tpu.memory_space<vmem>>, %arg8: memref<1x128xf32, #tpu.memory_space<vmem>>, %arg9: memref<1x1xf32, #tpu.memory_space<vmem>>, %arg10: memref<8x128xf32, #tpu.memory_space<vmem>>) attributes {dimension_semantics = [#tpu.dimension_semantics<parallel>], iteration_bounds = array<i64: 1>, scalar_prefetch = 0 : i64, scratch_operands = 0 : i64, tpu.core_type = #tpu.core_type<tc>, window_params = [{transform_indices = @transform_0, window_bounds = array<i64: 8, 8>}, {pipeline_mode = #tpu.pipeline_mode<synchronous>, transform_indices = @transform_1, window_bounds = array<i64: 1, 8>}, {pipeline_mode = #tpu.pipeline_mode<synchronous>, transform_indices = @transform_2, window_bounds = array<i64: 8, 8>}, {pipeline_mode = #tpu.pipeline_mode<synchronous>, transform_indices = @transform_3, window_bounds = array<i64: 1, 8>}, {pipeline_mode = #tpu.pipeline_mode<synchronous>, transform_indices = @transform_4, window_bounds = array<i64: 8, 128>}, {pipeline_mode = #tpu.pipeline_mode<synchronous>, transform_indices = @transform_5, window_bounds = array<i64: 128, 128>}, {pipeline_mode = #tpu.pipeline_mode<synchronous>, transform_indices = @transform_6, window_bounds = array<i64: 1, 128>}, {pipeline_mode = #tpu.pipeline_mode<synchronous>, transform_indices = @transform_7, window_bounds = array<i64: 1, 128>}, {pipeline_mode = #tpu.pipeline_mode<synchronous>, transform_indices = @transform_8, window_bounds = array<i64: 1, 1>}, {transform_indices = @transform_9, window_bounds = array<i64: 8, 128>}]} {
    %c0 = arith.constant 0 : index
    %c0_0 = arith.constant 0 : index
    %0 = vector.load %arg2[%c0, %c0_0] : memref<1x8xf32, #tpu.memory_space<vmem>>, vector<1x8xf32>
    %c0_1 = arith.constant 0 : index
    %c0_2 = arith.constant 0 : index
    %1 = vector.load %arg3[%c0_1, %c0_2] : memref<8x8xf32, #tpu.memory_space<vmem>>, vector<8x8xf32>
    %c0_3 = arith.constant 0 : index
    %c0_4 = arith.constant 0 : index
    %2 = vector.load %arg4[%c0_3, %c0_4] : memref<1x8xf32, #tpu.memory_space<vmem>>, vector<1x8xf32>
    %c0_5 = arith.constant 0 : index
    %c0_6 = arith.constant 0 : index
    %3 = vector.load %arg1[%c0_5, %c0_6] : memref<8x8xf32, #tpu.memory_space<vmem>>, vector<8x8xf32>
    %cst = arith.constant 0.000000e+00 : f32
    %4 = vector.broadcast %cst : f32 to vector<8x8xf32>
    %5 = vector.extract_strided_slice %3 {offsets = [0, 0], sizes = [8, 1], strides = [1, 1]} : vector<8x8xf32> to vector<8x1xf32>
    %6 = vector.broadcast %5 : vector<8x1xf32> to vector<8x8xf32>
    %7 = vector.broadcast %0 : vector<1x8xf32> to vector<8x8xf32>
    %8 = arith.mulf %6, %7 : vector<8x8xf32>
    %9 = vector.broadcast %2 : vector<1x8xf32> to vector<8x8xf32>
    %10 = arith.addf %9, %8 : vector<8x8xf32>
    %11 = vector.extract_strided_slice %4 {offsets = [0, 0], sizes = [8, 1], strides = [1, 1]} : vector<8x8xf32> to vector<8x1xf32>
    %12 = vector.extract_strided_slice %1 {offsets = [0, 0], sizes = [1, 8], strides = [1, 1]} : vector<8x8xf32> to vector<1x8xf32>
    %13 = vector.broadcast %11 : vector<8x1xf32> to vector<8x8xf32>
    %14 = vector.broadcast %12 : vector<1x8xf32> to vector<8x8xf32>
    %15 = arith.mulf %13, %14 : vector<8x8xf32>
    %16 = arith.addf %10, %15 : vector<8x8xf32>
    %17 = vector.extract_strided_slice %4 {offsets = [0, 1], sizes = [8, 1], strides = [1, 1]} : vector<8x8xf32> to vector<8x1xf32>
    %18 = vector.extract_strided_slice %1 {offsets = [1, 0], sizes = [1, 8], strides = [1, 1]} : vector<8x8xf32> to vector<1x8xf32>
    %19 = vector.broadcast %17 : vector<8x1xf32> to vector<8x8xf32>
    %20 = vector.broadcast %18 : vector<1x8xf32> to vector<8x8xf32>
    %21 = arith.mulf %19, %20 : vector<8x8xf32>
    %22 = arith.addf %16, %21 : vector<8x8xf32>
    %23 = vector.extract_strided_slice %4 {offsets = [0, 2], sizes = [8, 1], strides = [1, 1]} : vector<8x8xf32> to vector<8x1xf32>
    %24 = vector.extract_strided_slice %1 {offsets = [2, 0], sizes = [1, 8], strides = [1, 1]} : vector<8x8xf32> to vector<1x8xf32>
    %25 = vector.broadcast %23 : vector<8x1xf32> to vector<8x8xf32>
    %26 = vector.broadcast %24 : vector<1x8xf32> to vector<8x8xf32>
    %27 = arith.mulf %25, %26 : vector<8x8xf32>
    %28 = arith.addf %22, %27 : vector<8x8xf32>
    %29 = vector.extract_strided_slice %4 {offsets = [0, 3], sizes = [8, 1], strides = [1, 1]} : vector<8x8xf32> to vector<8x1xf32>
    %30 = vector.extract_strided_slice %1 {offsets = [3, 0], sizes = [1, 8], strides = [1, 1]} : vector<8x8xf32> to vector<1x8xf32>
    %31 = vector.broadcast %29 : vector<8x1xf32> to vector<8x8xf32>
    %32 = vector.broadcast %30 : vector<1x8xf32> to vector<8x8xf32>
    %33 = arith.mulf %31, %32 : vector<8x8xf32>
    %34 = arith.addf %28, %33 : vector<8x8xf32>
    %35 = vector.extract_strided_slice %4 {offsets = [0, 4], sizes = [8, 1], strides = [1, 1]} : vector<8x8xf32> to vector<8x1xf32>
    %36 = vector.extract_strided_slice %1 {offsets = [4, 0], sizes = [1, 8], strides = [1, 1]} : vector<8x8xf32> to vector<1x8xf32>
    %37 = vector.broadcast %35 : vector<8x1xf32> to vector<8x8xf32>
    %38 = vector.broadcast %36 : vector<1x8xf32> to vector<8x8xf32>
    %39 = arith.mulf %37, %38 : vector<8x8xf32>
    %40 = arith.addf %34, %39 : vector<8x8xf32>
    %41 = math.tanh %40 : vector<8x8xf32>
    %42 = vector.extract_strided_slice %3 {offsets = [0, 1], sizes = [8, 1], strides = [1, 1]} : vector<8x8xf32> to vector<8x1xf32>
    %43 = vector.broadcast %42 : vector<8x1xf32> to vector<8x8xf32>
    %44 = vector.broadcast %0 : vector<1x8xf32> to vector<8x8xf32>
    %45 = arith.mulf %43, %44 : vector<8x8xf32>
    %46 = vector.broadcast %2 : vector<1x8xf32> to vector<8x8xf32>
    %47 = arith.addf %46, %45 : vector<8x8xf32>
    %48 = vector.extract_strided_slice %41 {offsets = [0, 0], sizes = [8, 1], strides = [1, 1]} : vector<8x8xf32> to vector<8x1xf32>
    %49 = vector.extract_strided_slice %1 {offsets = [0, 0], sizes = [1, 8], strides = [1, 1]} : vector<8x8xf32> to vector<1x8xf32>
    %50 = vector.broadcast %48 : vector<8x1xf32> to vector<8x8xf32>
    %51 = vector.broadcast %49 : vector<1x8xf32> to vector<8x8xf32>
    %52 = arith.mulf %50, %51 : vector<8x8xf32>
    %53 = arith.addf %47, %52 : vector<8x8xf32>
    %54 = vector.extract_strided_slice %41 {offsets = [0, 1], sizes = [8, 1], strides = [1, 1]} : vector<8x8xf32> to vector<8x1xf32>
    %55 = vector.extract_strided_slice %1 {offsets = [1, 0], sizes = [1, 8], strides = [1, 1]} : vector<8x8xf32> to vector<1x8xf32>
    %56 = vector.broadcast %54 : vector<8x1xf32> to vector<8x8xf32>
    %57 = vector.broadcast %55 : vector<1x8xf32> to vector<8x8xf32>
    %58 = arith.mulf %56, %57 : vector<8x8xf32>
    %59 = arith.addf %53, %58 : vector<8x8xf32>
    %60 = vector.extract_strided_slice %41 {offsets = [0, 2], sizes = [8, 1], strides = [1, 1]} : vector<8x8xf32> to vector<8x1xf32>
    %61 = vector.extract_strided_slice %1 {offsets = [2, 0], sizes = [1, 8], strides = [1, 1]} : vector<8x8xf32> to vector<1x8xf32>
    %62 = vector.broadcast %60 : vector<8x1xf32> to vector<8x8xf32>
    %63 = vector.broadcast %61 : vector<1x8xf32> to vector<8x8xf32>
    %64 = arith.mulf %62, %63 : vector<8x8xf32>
    %65 = arith.addf %59, %64 : vector<8x8xf32>
    %66 = vector.extract_strided_slice %41 {offsets = [0, 3], sizes = [8, 1], strides = [1, 1]} : vector<8x8xf32> to vector<8x1xf32>
    %67 = vector.extract_strided_slice %1 {offsets = [3, 0], sizes = [1, 8], strides = [1, 1]} : vector<8x8xf32> to vector<1x8xf32>
    %68 = vector.broadcast %66 : vector<8x1xf32> to vector<8x8xf32>
    %69 = vector.broadcast %67 : vector<1x8xf32> to vector<8x8xf32>
    %70 = arith.mulf %68, %69 : vector<8x8xf32>
    %71 = arith.addf %65, %70 : vector<8x8xf32>
    %72 = vector.extract_strided_slice %41 {offsets = [0, 4], sizes = [8, 1], strides = [1, 1]} : vector<8x8xf32> to vector<8x1xf32>
    %73 = vector.extract_strided_slice %1 {offsets = [4, 0], sizes = [1, 8], strides = [1, 1]} : vector<8x8xf32> to vector<1x8xf32>
    %74 = vector.broadcast %72 : vector<8x1xf32> to vector<8x8xf32>
    %75 = vector.broadcast %73 : vector<1x8xf32> to vector<8x8xf32>
    %76 = arith.mulf %74, %75 : vector<8x8xf32>
    %77 = arith.addf %71, %76 : vector<8x8xf32>
    %78 = math.tanh %77 : vector<8x8xf32>
    %79 = vector.extract_strided_slice %3 {offsets = [0, 2], sizes = [8, 1], strides = [1, 1]} : vector<8x8xf32> to vector<8x1xf32>
    %80 = vector.broadcast %79 : vector<8x1xf32> to vector<8x8xf32>
    %81 = vector.broadcast %0 : vector<1x8xf32> to vector<8x8xf32>
    %82 = arith.mulf %80, %81 : vector<8x8xf32>
    %83 = vector.broadcast %2 : vector<1x8xf32> to vector<8x8xf32>
    %84 = arith.addf %83, %82 : vector<8x8xf32>
    %85 = vector.extract_strided_slice %78 {offsets = [0, 0], sizes = [8, 1], strides = [1, 1]} : vector<8x8xf32> to vector<8x1xf32>
    %86 = vector.extract_strided_slice %1 {offsets = [0, 0], sizes = [1, 8], strides = [1, 1]} : vector<8x8xf32> to vector<1x8xf32>
    %87 = vector.broadcast %85 : vector<8x1xf32> to vector<8x8xf32>
    %88 = vector.broadcast %86 : vector<1x8xf32> to vector<8x8xf32>
    %89 = arith.mulf %87, %88 : vector<8x8xf32>
    %90 = arith.addf %84, %89 : vector<8x8xf32>
    %91 = vector.extract_strided_slice %78 {offsets = [0, 1], sizes = [8, 1], strides = [1, 1]} : vector<8x8xf32> to vector<8x1xf32>
    %92 = vector.extract_strided_slice %1 {offsets = [1, 0], sizes = [1, 8], strides = [1, 1]} : vector<8x8xf32> to vector<1x8xf32>
    %93 = vector.broadcast %91 : vector<8x1xf32> to vector<8x8xf32>
    %94 = vector.broadcast %92 : vector<1x8xf32> to vector<8x8xf32>
    %95 = arith.mulf %93, %94 : vector<8x8xf32>
    %96 = arith.addf %90, %95 : vector<8x8xf32>
    %97 = vector.extract_strided_slice %78 {offsets = [0, 2], sizes = [8, 1], strides = [1, 1]} : vector<8x8xf32> to vector<8x1xf32>
    %98 = vector.extract_strided_slice %1 {offsets = [2, 0], sizes = [1, 8], strides = [1, 1]} : vector<8x8xf32> to vector<1x8xf32>
    %99 = vector.broadcast %97 : vector<8x1xf32> to vector<8x8xf32>
    %100 = vector.broadcast %98 : vector<1x8xf32> to vector<8x8xf32>
    %101 = arith.mulf %99, %100 : vector<8x8xf32>
    %102 = arith.addf %96, %101 : vector<8x8xf32>
    %103 = vector.extract_strided_slice %78 {offsets = [0, 3], sizes = [8, 1], strides = [1, 1]} : vector<8x8xf32> to vector<8x1xf32>
    %104 = vector.extract_strided_slice %1 {offsets = [3, 0], sizes = [1, 8], strides = [1, 1]} : vector<8x8xf32> to vector<1x8xf32>
    %105 = vector.broadcast %103 : vector<8x1xf32> to vector<8x8xf32>
    %106 = vector.broadcast %104 : vector<1x8xf32> to vector<8x8xf32>
    %107 = arith.mulf %105, %106 : vector<8x8xf32>
    %108 = arith.addf %102, %107 : vector<8x8xf32>
    %109 = vector.extract_strided_slice %78 {offsets = [0, 4], sizes = [8, 1], strides = [1, 1]} : vector<8x8xf32> to vector<8x1xf32>
    %110 = vector.extract_strided_slice %1 {offsets = [4, 0], sizes = [1, 8], strides = [1, 1]} : vector<8x8xf32> to vector<1x8xf32>
    %111 = vector.broadcast %109 : vector<8x1xf32> to vector<8x8xf32>
    %112 = vector.broadcast %110 : vector<1x8xf32> to vector<8x8xf32>
    %113 = arith.mulf %111, %112 : vector<8x8xf32>
    %114 = arith.addf %108, %113 : vector<8x8xf32>
    %115 = math.tanh %114 : vector<8x8xf32>
    %116 = vector.extract_strided_slice %3 {offsets = [0, 3], sizes = [8, 1], strides = [1, 1]} : vector<8x8xf32> to vector<8x1xf32>
    %117 = vector.broadcast %116 : vector<8x1xf32> to vector<8x8xf32>
    %118 = vector.broadcast %0 : vector<1x8xf32> to vector<8x8xf32>
    %119 = arith.mulf %117, %118 : vector<8x8xf32>
    %120 = vector.broadcast %2 : vector<1x8xf32> to vector<8x8xf32>
    %121 = arith.addf %120, %119 : vector<8x8xf32>
    %122 = vector.extract_strided_slice %115 {offsets = [0, 0], sizes = [8, 1], strides = [1, 1]} : vector<8x8xf32> to vector<8x1xf32>
    %123 = vector.extract_strided_slice %1 {offsets = [0, 0], sizes = [1, 8], strides = [1, 1]} : vector<8x8xf32> to vector<1x8xf32>
    %124 = vector.broadcast %122 : vector<8x1xf32> to vector<8x8xf32>
    %125 = vector.broadcast %123 : vector<1x8xf32> to vector<8x8xf32>
    %126 = arith.mulf %124, %125 : vector<8x8xf32>
    %127 = arith.addf %121, %126 : vector<8x8xf32>
    %128 = vector.extract_strided_slice %115 {offsets = [0, 1], sizes = [8, 1], strides = [1, 1]} : vector<8x8xf32> to vector<8x1xf32>
    %129 = vector.extract_strided_slice %1 {offsets = [1, 0], sizes = [1, 8], strides = [1, 1]} : vector<8x8xf32> to vector<1x8xf32>
    %130 = vector.broadcast %128 : vector<8x1xf32> to vector<8x8xf32>
    %131 = vector.broadcast %129 : vector<1x8xf32> to vector<8x8xf32>
    %132 = arith.mulf %130, %131 : vector<8x8xf32>
    %133 = arith.addf %127, %132 : vector<8x8xf32>
    %134 = vector.extract_strided_slice %115 {offsets = [0, 2], sizes = [8, 1], strides = [1, 1]} : vector<8x8xf32> to vector<8x1xf32>
    %135 = vector.extract_strided_slice %1 {offsets = [2, 0], sizes = [1, 8], strides = [1, 1]} : vector<8x8xf32> to vector<1x8xf32>
    %136 = vector.broadcast %134 : vector<8x1xf32> to vector<8x8xf32>
    %137 = vector.broadcast %135 : vector<1x8xf32> to vector<8x8xf32>
    %138 = arith.mulf %136, %137 : vector<8x8xf32>
    %139 = arith.addf %133, %138 : vector<8x8xf32>
    %140 = vector.extract_strided_slice %115 {offsets = [0, 3], sizes = [8, 1], strides = [1, 1]} : vector<8x8xf32> to vector<8x1xf32>
    %141 = vector.extract_strided_slice %1 {offsets = [3, 0], sizes = [1, 8], strides = [1, 1]} : vector<8x8xf32> to vector<1x8xf32>
    %142 = vector.broadcast %140 : vector<8x1xf32> to vector<8x8xf32>
    %143 = vector.broadcast %141 : vector<1x8xf32> to vector<8x8xf32>
    %144 = arith.mulf %142, %143 : vector<8x8xf32>
    %145 = arith.addf %139, %144 : vector<8x8xf32>
    %146 = vector.extract_strided_slice %115 {offsets = [0, 4], sizes = [8, 1], strides = [1, 1]} : vector<8x8xf32> to vector<8x1xf32>
    %147 = vector.extract_strided_slice %1 {offsets = [4, 0], sizes = [1, 8], strides = [1, 1]} : vector<8x8xf32> to vector<1x8xf32>
    %148 = vector.broadcast %146 : vector<8x1xf32> to vector<8x8xf32>
    %149 = vector.broadcast %147 : vector<1x8xf32> to vector<8x8xf32>
    %150 = arith.mulf %148, %149 : vector<8x8xf32>
    %151 = arith.addf %145, %150 : vector<8x8xf32>
    %152 = math.tanh %151 : vector<8x8xf32>
    %153 = vector.extract_strided_slice %3 {offsets = [0, 4], sizes = [8, 1], strides = [1, 1]} : vector<8x8xf32> to vector<8x1xf32>
    %154 = vector.broadcast %153 : vector<8x1xf32> to vector<8x8xf32>
    %155 = vector.broadcast %0 : vector<1x8xf32> to vector<8x8xf32>
    %156 = arith.mulf %154, %155 : vector<8x8xf32>
    %157 = vector.broadcast %2 : vector<1x8xf32> to vector<8x8xf32>
    %158 = arith.addf %157, %156 : vector<8x8xf32>
    %159 = vector.extract_strided_slice %152 {offsets = [0, 0], sizes = [8, 1], strides = [1, 1]} : vector<8x8xf32> to vector<8x1xf32>
    %160 = vector.extract_strided_slice %1 {offsets = [0, 0], sizes = [1, 8], strides = [1, 1]} : vector<8x8xf32> to vector<1x8xf32>
    %161 = vector.broadcast %159 : vector<8x1xf32> to vector<8x8xf32>
    %162 = vector.broadcast %160 : vector<1x8xf32> to vector<8x8xf32>
    %163 = arith.mulf %161, %162 : vector<8x8xf32>
    %164 = arith.addf %158, %163 : vector<8x8xf32>
    %165 = vector.extract_strided_slice %152 {offsets = [0, 1], sizes = [8, 1], strides = [1, 1]} : vector<8x8xf32> to vector<8x1xf32>
    %166 = vector.extract_strided_slice %1 {offsets = [1, 0], sizes = [1, 8], strides = [1, 1]} : vector<8x8xf32> to vector<1x8xf32>
    %167 = vector.broadcast %165 : vector<8x1xf32> to vector<8x8xf32>
    %168 = vector.broadcast %166 : vector<1x8xf32> to vector<8x8xf32>
    %169 = arith.mulf %167, %168 : vector<8x8xf32>
    %170 = arith.addf %164, %169 : vector<8x8xf32>
    %171 = vector.extract_strided_slice %152 {offsets = [0, 2], sizes = [8, 1], strides = [1, 1]} : vector<8x8xf32> to vector<8x1xf32>
    %172 = vector.extract_strided_slice %1 {offsets = [2, 0], sizes = [1, 8], strides = [1, 1]} : vector<8x8xf32> to vector<1x8xf32>
    %173 = vector.broadcast %171 : vector<8x1xf32> to vector<8x8xf32>
    %174 = vector.broadcast %172 : vector<1x8xf32> to vector<8x8xf32>
    %175 = arith.mulf %173, %174 : vector<8x8xf32>
    %176 = arith.addf %170, %175 : vector<8x8xf32>
    %177 = vector.extract_strided_slice %152 {offsets = [0, 3], sizes = [8, 1], strides = [1, 1]} : vector<8x8xf32> to vector<8x1xf32>
    %178 = vector.extract_strided_slice %1 {offsets = [3, 0], sizes = [1, 8], strides = [1, 1]} : vector<8x8xf32> to vector<1x8xf32>
    %179 = vector.broadcast %177 : vector<8x1xf32> to vector<8x8xf32>
    %180 = vector.broadcast %178 : vector<1x8xf32> to vector<8x8xf32>
    %181 = arith.mulf %179, %180 : vector<8x8xf32>
    %182 = arith.addf %176, %181 : vector<8x8xf32>
    %183 = vector.extract_strided_slice %152 {offsets = [0, 4], sizes = [8, 1], strides = [1, 1]} : vector<8x8xf32> to vector<8x1xf32>
    %184 = vector.extract_strided_slice %1 {offsets = [4, 0], sizes = [1, 8], strides = [1, 1]} : vector<8x8xf32> to vector<1x8xf32>
    %185 = vector.broadcast %183 : vector<8x1xf32> to vector<8x8xf32>
    %186 = vector.broadcast %184 : vector<1x8xf32> to vector<8x8xf32>
    %187 = arith.mulf %185, %186 : vector<8x8xf32>
    %188 = arith.addf %182, %187 : vector<8x8xf32>
    %189 = math.tanh %188 : vector<8x8xf32>
    %190 = vector.extract_strided_slice %3 {offsets = [0, 5], sizes = [8, 1], strides = [1, 1]} : vector<8x8xf32> to vector<8x1xf32>
    %191 = vector.broadcast %190 : vector<8x1xf32> to vector<8x8xf32>
    %192 = vector.broadcast %0 : vector<1x8xf32> to vector<8x8xf32>
    %193 = arith.mulf %191, %192 : vector<8x8xf32>
    %194 = vector.broadcast %2 : vector<1x8xf32> to vector<8x8xf32>
    %195 = arith.addf %194, %193 : vector<8x8xf32>
    %196 = vector.extract_strided_slice %189 {offsets = [0, 0], sizes = [8, 1], strides = [1, 1]} : vector<8x8xf32> to vector<8x1xf32>
    %197 = vector.extract_strided_slice %1 {offsets = [0, 0], sizes = [1, 8], strides = [1, 1]} : vector<8x8xf32> to vector<1x8xf32>
    %198 = vector.broadcast %196 : vector<8x1xf32> to vector<8x8xf32>
    %199 = vector.broadcast %197 : vector<1x8xf32> to vector<8x8xf32>
    %200 = arith.mulf %198, %199 : vector<8x8xf32>
    %201 = arith.addf %195, %200 : vector<8x8xf32>
    %202 = vector.extract_strided_slice %189 {offsets = [0, 1], sizes = [8, 1], strides = [1, 1]} : vector<8x8xf32> to vector<8x1xf32>
    %203 = vector.extract_strided_slice %1 {offsets = [1, 0], sizes = [1, 8], strides = [1, 1]} : vector<8x8xf32> to vector<1x8xf32>
    %204 = vector.broadcast %202 : vector<8x1xf32> to vector<8x8xf32>
    %205 = vector.broadcast %203 : vector<1x8xf32> to vector<8x8xf32>
    %206 = arith.mulf %204, %205 : vector<8x8xf32>
    %207 = arith.addf %201, %206 : vector<8x8xf32>
    %208 = vector.extract_strided_slice %189 {offsets = [0, 2], sizes = [8, 1], strides = [1, 1]} : vector<8x8xf32> to vector<8x1xf32>
    %209 = vector.extract_strided_slice %1 {offsets = [2, 0], sizes = [1, 8], strides = [1, 1]} : vector<8x8xf32> to vector<1x8xf32>
    %210 = vector.broadcast %208 : vector<8x1xf32> to vector<8x8xf32>
    %211 = vector.broadcast %209 : vector<1x8xf32> to vector<8x8xf32>
    %212 = arith.mulf %210, %211 : vector<8x8xf32>
    %213 = arith.addf %207, %212 : vector<8x8xf32>
    %214 = vector.extract_strided_slice %189 {offsets = [0, 3], sizes = [8, 1], strides = [1, 1]} : vector<8x8xf32> to vector<8x1xf32>
    %215 = vector.extract_strided_slice %1 {offsets = [3, 0], sizes = [1, 8], strides = [1, 1]} : vector<8x8xf32> to vector<1x8xf32>
    %216 = vector.broadcast %214 : vector<8x1xf32> to vector<8x8xf32>
    %217 = vector.broadcast %215 : vector<1x8xf32> to vector<8x8xf32>
    %218 = arith.mulf %216, %217 : vector<8x8xf32>
    %219 = arith.addf %213, %218 : vector<8x8xf32>
    %220 = vector.extract_strided_slice %189 {offsets = [0, 4], sizes = [8, 1], strides = [1, 1]} : vector<8x8xf32> to vector<8x1xf32>
    %221 = vector.extract_strided_slice %1 {offsets = [4, 0], sizes = [1, 8], strides = [1, 1]} : vector<8x8xf32> to vector<1x8xf32>
    %222 = vector.broadcast %220 : vector<8x1xf32> to vector<8x8xf32>
    %223 = vector.broadcast %221 : vector<1x8xf32> to vector<8x8xf32>
    %224 = arith.mulf %222, %223 : vector<8x8xf32>
    %225 = arith.addf %219, %224 : vector<8x8xf32>
    %226 = math.tanh %225 : vector<8x8xf32>
    %227 = vector.extract_strided_slice %3 {offsets = [0, 6], sizes = [8, 1], strides = [1, 1]} : vector<8x8xf32> to vector<8x1xf32>
    %228 = vector.broadcast %227 : vector<8x1xf32> to vector<8x8xf32>
    %229 = vector.broadcast %0 : vector<1x8xf32> to vector<8x8xf32>
    %230 = arith.mulf %228, %229 : vector<8x8xf32>
    %231 = vector.broadcast %2 : vector<1x8xf32> to vector<8x8xf32>
    %232 = arith.addf %231, %230 : vector<8x8xf32>
    %233 = vector.extract_strided_slice %226 {offsets = [0, 0], sizes = [8, 1], strides = [1, 1]} : vector<8x8xf32> to vector<8x1xf32>
    %234 = vector.extract_strided_slice %1 {offsets = [0, 0], sizes = [1, 8], strides = [1, 1]} : vector<8x8xf32> to vector<1x8xf32>
    %235 = vector.broadcast %233 : vector<8x1xf32> to vector<8x8xf32>
    %236 = vector.broadcast %234 : vector<1x8xf32> to vector<8x8xf32>
    %237 = arith.mulf %235, %236 : vector<8x8xf32>
    %238 = arith.addf %232, %237 : vector<8x8xf32>
    %239 = vector.extract_strided_slice %226 {offsets = [0, 1], sizes = [8, 1], strides = [1, 1]} : vector<8x8xf32> to vector<8x1xf32>
    %240 = vector.extract_strided_slice %1 {offsets = [1, 0], sizes = [1, 8], strides = [1, 1]} : vector<8x8xf32> to vector<1x8xf32>
    %241 = vector.broadcast %239 : vector<8x1xf32> to vector<8x8xf32>
    %242 = vector.broadcast %240 : vector<1x8xf32> to vector<8x8xf32>
    %243 = arith.mulf %241, %242 : vector<8x8xf32>
    %244 = arith.addf %238, %243 : vector<8x8xf32>
    %245 = vector.extract_strided_slice %226 {offsets = [0, 2], sizes = [8, 1], strides = [1, 1]} : vector<8x8xf32> to vector<8x1xf32>
    %246 = vector.extract_strided_slice %1 {offsets = [2, 0], sizes = [1, 8], strides = [1, 1]} : vector<8x8xf32> to vector<1x8xf32>
    %247 = vector.broadcast %245 : vector<8x1xf32> to vector<8x8xf32>
    %248 = vector.broadcast %246 : vector<1x8xf32> to vector<8x8xf32>
    %249 = arith.mulf %247, %248 : vector<8x8xf32>
    %250 = arith.addf %244, %249 : vector<8x8xf32>
    %251 = vector.extract_strided_slice %226 {offsets = [0, 3], sizes = [8, 1], strides = [1, 1]} : vector<8x8xf32> to vector<8x1xf32>
    %252 = vector.extract_strided_slice %1 {offsets = [3, 0], sizes = [1, 8], strides = [1, 1]} : vector<8x8xf32> to vector<1x8xf32>
    %253 = vector.broadcast %251 : vector<8x1xf32> to vector<8x8xf32>
    %254 = vector.broadcast %252 : vector<1x8xf32> to vector<8x8xf32>
    %255 = arith.mulf %253, %254 : vector<8x8xf32>
    %256 = arith.addf %250, %255 : vector<8x8xf32>
    %257 = vector.extract_strided_slice %226 {offsets = [0, 4], sizes = [8, 1], strides = [1, 1]} : vector<8x8xf32> to vector<8x1xf32>
    %258 = vector.extract_strided_slice %1 {offsets = [4, 0], sizes = [1, 8], strides = [1, 1]} : vector<8x8xf32> to vector<1x8xf32>
    %259 = vector.broadcast %257 : vector<8x1xf32> to vector<8x8xf32>
    %260 = vector.broadcast %258 : vector<1x8xf32> to vector<8x8xf32>
    %261 = arith.mulf %259, %260 : vector<8x8xf32>
    %262 = arith.addf %256, %261 : vector<8x8xf32>
    %263 = math.tanh %262 : vector<8x8xf32>
    %264 = vector.extract_strided_slice %3 {offsets = [0, 7], sizes = [8, 1], strides = [1, 1]} : vector<8x8xf32> to vector<8x1xf32>
    %265 = vector.broadcast %264 : vector<8x1xf32> to vector<8x8xf32>
    %266 = vector.broadcast %0 : vector<1x8xf32> to vector<8x8xf32>
    %267 = arith.mulf %265, %266 : vector<8x8xf32>
    %268 = vector.broadcast %2 : vector<1x8xf32> to vector<8x8xf32>
    %269 = arith.addf %268, %267 : vector<8x8xf32>
    %270 = vector.extract_strided_slice %263 {offsets = [0, 0], sizes = [8, 1], strides = [1, 1]} : vector<8x8xf32> to vector<8x1xf32>
    %271 = vector.extract_strided_slice %1 {offsets = [0, 0], sizes = [1, 8], strides = [1, 1]} : vector<8x8xf32> to vector<1x8xf32>
    %272 = vector.broadcast %270 : vector<8x1xf32> to vector<8x8xf32>
    %273 = vector.broadcast %271 : vector<1x8xf32> to vector<8x8xf32>
    %274 = arith.mulf %272, %273 : vector<8x8xf32>
    %275 = arith.addf %269, %274 : vector<8x8xf32>
    %276 = vector.extract_strided_slice %263 {offsets = [0, 1], sizes = [8, 1], strides = [1, 1]} : vector<8x8xf32> to vector<8x1xf32>
    %277 = vector.extract_strided_slice %1 {offsets = [1, 0], sizes = [1, 8], strides = [1, 1]} : vector<8x8xf32> to vector<1x8xf32>
    %278 = vector.broadcast %276 : vector<8x1xf32> to vector<8x8xf32>
    %279 = vector.broadcast %277 : vector<1x8xf32> to vector<8x8xf32>
    %280 = arith.mulf %278, %279 : vector<8x8xf32>
    %281 = arith.addf %275, %280 : vector<8x8xf32>
    %282 = vector.extract_strided_slice %263 {offsets = [0, 2], sizes = [8, 1], strides = [1, 1]} : vector<8x8xf32> to vector<8x1xf32>
    %283 = vector.extract_strided_slice %1 {offsets = [2, 0], sizes = [1, 8], strides = [1, 1]} : vector<8x8xf32> to vector<1x8xf32>
    %284 = vector.broadcast %282 : vector<8x1xf32> to vector<8x8xf32>
    %285 = vector.broadcast %283 : vector<1x8xf32> to vector<8x8xf32>
    %286 = arith.mulf %284, %285 : vector<8x8xf32>
    %287 = arith.addf %281, %286 : vector<8x8xf32>
    %288 = vector.extract_strided_slice %263 {offsets = [0, 3], sizes = [8, 1], strides = [1, 1]} : vector<8x8xf32> to vector<8x1xf32>
    %289 = vector.extract_strided_slice %1 {offsets = [3, 0], sizes = [1, 8], strides = [1, 1]} : vector<8x8xf32> to vector<1x8xf32>
    %290 = vector.broadcast %288 : vector<8x1xf32> to vector<8x8xf32>
    %291 = vector.broadcast %289 : vector<1x8xf32> to vector<8x8xf32>
    %292 = arith.mulf %290, %291 : vector<8x8xf32>
    %293 = arith.addf %287, %292 : vector<8x8xf32>
    %294 = vector.extract_strided_slice %263 {offsets = [0, 4], sizes = [8, 1], strides = [1, 1]} : vector<8x8xf32> to vector<8x1xf32>
    %295 = vector.extract_strided_slice %1 {offsets = [4, 0], sizes = [1, 8], strides = [1, 1]} : vector<8x8xf32> to vector<1x8xf32>
    %296 = vector.broadcast %294 : vector<8x1xf32> to vector<8x8xf32>
    %297 = vector.broadcast %295 : vector<1x8xf32> to vector<8x8xf32>
    %298 = arith.mulf %296, %297 : vector<8x8xf32>
    %299 = arith.addf %293, %298 : vector<8x8xf32>
    %300 = math.tanh %299 : vector<8x8xf32>
    %c0_7 = arith.constant 0 : index
    %c0_8 = arith.constant 0 : index
    %301 = vector.load %arg5[%c0_7, %c0_8] : memref<8x128xbf16, #tpu.memory_space<vmem>>, vector<8x128xbf16>
    %c0_9 = arith.constant 0 : index
    %c0_10 = arith.constant 0 : index
    %302 = vector.load %arg6[%c0_9, %c0_10] : memref<128x128xbf16, #tpu.memory_space<vmem>>, vector<128x128xbf16>
    %c0_11 = arith.constant 0 : index
    %c0_12 = arith.constant 0 : index
    %303 = vector.load %arg7[%c0_11, %c0_12] : memref<1x128xf32, #tpu.memory_space<vmem>>, vector<1x128xf32>
    %304 = tpu.concatenate %41, %78, %115, %152, %189, %226, %263, %300 in 0 : vector<8x8xf32>, vector<8x8xf32>, vector<8x8xf32>, vector<8x8xf32>, vector<8x8xf32>, vector<8x8xf32>, vector<8x8xf32>, vector<8x8xf32> -> vector<64x8xf32>
    %305 = arith.truncf %304 : vector<64x8xf32> to vector<64x8xbf16>
    %cst_13 = arith.constant dense<0.000000e+00> : vector<64x128xf32>
    %306 = tpu.matmul %305, %301, %cst_13 {dimension_numbers = #tpu.dot_dimension_numbers<[1], [0], [0], [1], [0, 0, 1, 1], [], []>} : vector<64x8xbf16>, vector<8x128xbf16>, vector<64x128xf32> -> vector<64x128xf32>
    %307 = vector.broadcast %303 : vector<1x128xf32> to vector<64x128xf32>
    %308 = arith.addf %306, %307 : vector<64x128xf32>
    %309 = vector.shape_cast %308 : vector<64x128xf32> to vector<8x8x128xf32>
    %cst_14 = arith.constant 0.000000e+00 : f32
    %310 = vector.broadcast %cst_14 : f32 to vector<8x128xf32>
    %311 = arith.truncf %310 : vector<8x128xf32> to vector<8x128xbf16>
    %cst_15 = arith.constant dense<0.000000e+00> : vector<8x128xf32>
    %312 = tpu.matmul %311, %302, %cst_15 {dimension_numbers = #tpu.dot_dimension_numbers<[1], [0], [0], [1], [0, 0, 1, 1], [], []>} : vector<8x128xbf16>, vector<128x128xbf16>, vector<8x128xf32> -> vector<8x128xf32>
    %313 = vector.extract_strided_slice %309 {offsets = [0, 0, 0], sizes = [1, 8, 128], strides = [1, 1, 1]} : vector<8x8x128xf32> to vector<1x8x128xf32>
    %314 = vector.shape_cast %313 : vector<1x8x128xf32> to vector<8x128xf32>
    %315 = arith.addf %314, %312 : vector<8x128xf32>
    %316 = math.tanh %315 : vector<8x128xf32>
    %317 = arith.truncf %316 : vector<8x128xf32> to vector<8x128xbf16>
    %cst_16 = arith.constant dense<0.000000e+00> : vector<8x128xf32>
    %318 = tpu.matmul %317, %302, %cst_16 {dimension_numbers = #tpu.dot_dimension_numbers<[1], [0], [0], [1], [0, 0, 1, 1], [], []>} : vector<8x128xbf16>, vector<128x128xbf16>, vector<8x128xf32> -> vector<8x128xf32>
    %319 = vector.extract_strided_slice %309 {offsets = [1, 0, 0], sizes = [1, 8, 128], strides = [1, 1, 1]} : vector<8x8x128xf32> to vector<1x8x128xf32>
    %320 = vector.shape_cast %319 : vector<1x8x128xf32> to vector<8x128xf32>
    %321 = arith.addf %320, %318 : vector<8x128xf32>
    %322 = math.tanh %321 : vector<8x128xf32>
    %323 = arith.truncf %322 : vector<8x128xf32> to vector<8x128xbf16>
    %cst_17 = arith.constant dense<0.000000e+00> : vector<8x128xf32>
    %324 = tpu.matmul %323, %302, %cst_17 {dimension_numbers = #tpu.dot_dimension_numbers<[1], [0], [0], [1], [0, 0, 1, 1], [], []>} : vector<8x128xbf16>, vector<128x128xbf16>, vector<8x128xf32> -> vector<8x128xf32>
    %325 = vector.extract_strided_slice %309 {offsets = [2, 0, 0], sizes = [1, 8, 128], strides = [1, 1, 1]} : vector<8x8x128xf32> to vector<1x8x128xf32>
    %326 = vector.shape_cast %325 : vector<1x8x128xf32> to vector<8x128xf32>
    %327 = arith.addf %326, %324 : vector<8x128xf32>
    %328 = math.tanh %327 : vector<8x128xf32>
    %329 = arith.truncf %328 : vector<8x128xf32> to vector<8x128xbf16>
    %cst_18 = arith.constant dense<0.000000e+00> : vector<8x128xf32>
    %330 = tpu.matmul %329, %302, %cst_18 {dimension_numbers = #tpu.dot_dimension_numbers<[1], [0], [0], [1], [0, 0, 1, 1], [], []>} : vector<8x128xbf16>, vector<128x128xbf16>, vector<8x128xf32> -> vector<8x128xf32>
    %331 = vector.extract_strided_slice %309 {offsets = [3, 0, 0], sizes = [1, 8, 128], strides = [1, 1, 1]} : vector<8x8x128xf32> to vector<1x8x128xf32>
    %332 = vector.shape_cast %331 : vector<1x8x128xf32> to vector<8x128xf32>
    %333 = arith.addf %332, %330 : vector<8x128xf32>
    %334 = math.tanh %333 : vector<8x128xf32>
    %335 = arith.truncf %334 : vector<8x128xf32> to vector<8x128xbf16>
    %cst_19 = arith.constant dense<0.000000e+00> : vector<8x128xf32>
    %336 = tpu.matmul %335, %302, %cst_19 {dimension_numbers = #tpu.dot_dimension_numbers<[1], [0], [0], [1], [0, 0, 1, 1], [], []>} : vector<8x128xbf16>, vector<128x128xbf16>, vector<8x128xf32> -> vector<8x128xf32>
    %337 = vector.extract_strided_slice %309 {offsets = [4, 0, 0], sizes = [1, 8, 128], strides = [1, 1, 1]} : vector<8x8x128xf32> to vector<1x8x128xf32>
    %338 = vector.shape_cast %337 : vector<1x8x128xf32> to vector<8x128xf32>
    %339 = arith.addf %338, %336 : vector<8x128xf32>
    %340 = math.tanh %339 : vector<8x128xf32>
    %341 = arith.truncf %340 : vector<8x128xf32> to vector<8x128xbf16>
    %cst_20 = arith.constant dense<0.000000e+00> : vector<8x128xf32>
    %342 = tpu.matmul %341, %302, %cst_20 {dimension_numbers = #tpu.dot_dimension_numbers<[1], [0], [0], [1], [0, 0, 1, 1], [], []>} : vector<8x128xbf16>, vector<128x128xbf16>, vector<8x128xf32> -> vector<8x128xf32>
    %343 = vector.extract_strided_slice %309 {offsets = [5, 0, 0], sizes = [1, 8, 128], strides = [1, 1, 1]} : vector<8x8x128xf32> to vector<1x8x128xf32>
    %344 = vector.shape_cast %343 : vector<1x8x128xf32> to vector<8x128xf32>
    %345 = arith.addf %344, %342 : vector<8x128xf32>
    %346 = math.tanh %345 : vector<8x128xf32>
    %347 = arith.truncf %346 : vector<8x128xf32> to vector<8x128xbf16>
    %cst_21 = arith.constant dense<0.000000e+00> : vector<8x128xf32>
    %348 = tpu.matmul %347, %302, %cst_21 {dimension_numbers = #tpu.dot_dimension_numbers<[1], [0], [0], [1], [0, 0, 1, 1], [], []>} : vector<8x128xbf16>, vector<128x128xbf16>, vector<8x128xf32> -> vector<8x128xf32>
    %349 = vector.extract_strided_slice %309 {offsets = [6, 0, 0], sizes = [1, 8, 128], strides = [1, 1, 1]} : vector<8x8x128xf32> to vector<1x8x128xf32>
    %350 = vector.shape_cast %349 : vector<1x8x128xf32> to vector<8x128xf32>
    %351 = arith.addf %350, %348 : vector<8x128xf32>
    %352 = math.tanh %351 : vector<8x128xf32>
    %353 = arith.truncf %352 : vector<8x128xf32> to vector<8x128xbf16>
    %cst_22 = arith.constant dense<0.000000e+00> : vector<8x128xf32>
    %354 = tpu.matmul %353, %302, %cst_22 {dimension_numbers = #tpu.dot_dimension_numbers<[1], [0], [0], [1], [0, 0, 1, 1], [], []>} : vector<8x128xbf16>, vector<128x128xbf16>, vector<8x128xf32> -> vector<8x128xf32>
    %355 = vector.extract_strided_slice %309 {offsets = [7, 0, 0], sizes = [1, 8, 128], strides = [1, 1, 1]} : vector<8x8x128xf32> to vector<1x8x128xf32>
    %356 = vector.shape_cast %355 : vector<1x8x128xf32> to vector<8x128xf32>
    %357 = arith.addf %356, %354 : vector<8x128xf32>
    %358 = math.tanh %357 : vector<8x128xf32>
    %c0_23 = arith.constant 0 : index
    %c0_24 = arith.constant 0 : index
    %359 = vector.load %arg8[%c0_23, %c0_24] : memref<1x128xf32, #tpu.memory_space<vmem>>, vector<1x128xf32>
    %360 = vector.broadcast %359 : vector<1x128xf32> to vector<8x128xf32>
    %361 = arith.mulf %358, %360 : vector<8x128xf32>
    %cst_25 = arith.constant dense<0.000000e+00> : vector<8xf32>
    %362 = vector.multi_reduction <add>, %361, %cst_25 [1] : vector<8x128xf32> to vector<8xf32>
    %363 = vector.shape_cast %362 : vector<8xf32> to vector<8x1xf32>
    %c0_26 = arith.constant 0 : index
    %c0_27 = arith.constant 0 : index
    %364 = vector.load %arg9[%c0_26, %c0_27] : memref<1x1xf32, #tpu.memory_space<vmem>>, vector<1x1xf32>
    %365 = vector.broadcast %364 : vector<1x1xf32> to vector<8x1xf32>
    %366 = arith.addf %363, %365 : vector<8x1xf32>
    %cst_28 = arith.constant 0.000000e+00 : f32
    %367 = vector.broadcast %cst_28 : f32 to vector<8x1xf32>
    %368 = arith.maximumf %366, %367 : vector<8x1xf32>
    %369 = vector.shape_cast %368 : vector<8x1xf32> to vector<8x1xf32>
    %370 = vector.broadcast %369 : vector<8x1xf32> to vector<8x128xf32>
    %c0_29 = arith.constant 0 : index
    %c0_30 = arith.constant 0 : index
    %371 = vector.load %arg10[%c0_29, %c0_30] : memref<8x128xf32, #tpu.memory_space<vmem>>, vector<8x128xf32>
    tpu.vector_store %arg10[%c0_29, %c0_30], %370 {strides = array<i32>} : memref<8x128xf32, #tpu.memory_space<vmem>>, vector<8x128xf32>,
    return
  }
  func.func @transform_0(%arg0: i32) -> (i32, i32) {
    %c0_i32 = arith.constant 0 : i32
    %c0_i32_0 = arith.constant 0 : i32
    return %arg0, %c0_i32 : i32, i32
  }
  func.func @transform_1(%arg0: i32) -> (i32, i32) {
    %c0_i32 = arith.constant 0 : i32
    %c0_i32_0 = arith.constant 0 : i32
    %c0_i32_1 = arith.constant 0 : i32
    return %c0_i32, %c0_i32_0 : i32, i32
  }
  func.func @transform_2(%arg0: i32) -> (i32, i32) {
    %c0_i32 = arith.constant 0 : i32
    %c0_i32_0 = arith.constant 0 : i32
    %c0_i32_1 = arith.constant 0 : i32
    return %c0_i32, %c0_i32_0 : i32, i32
  }
  func.func @transform_3(%arg0: i32) -> (i32, i32) {
    %c0_i32 = arith.constant 0 : i32
    %c0_i32_0 = arith.constant 0 : i32
    %c0_i32_1 = arith.constant 0 : i32
    return %c0_i32, %c0_i32_0 : i32, i32
  }
  func.func @transform_4(%arg0: i32) -> (i32, i32) {
    %c0_i32 = arith.constant 0 : i32
    %c0_i32_0 = arith.constant 0 : i32
    %c0_i32_1 = arith.constant 0 : i32
    return %c0_i32, %c0_i32_0 : i32, i32
  }
  func.func @transform_5(%arg0: i32) -> (i32, i32) {
    %c0_i32 = arith.constant 0 : i32
    %c0_i32_0 = arith.constant 0 : i32
    %c0_i32_1 = arith.constant 0 : i32
    return %c0_i32, %c0_i32_0 : i32, i32
  }
  func.func @transform_6(%arg0: i32) -> (i32, i32) {
    %c0_i32 = arith.constant 0 : i32
    %c0_i32_0 = arith.constant 0 : i32
    %c0_i32_1 = arith.constant 0 : i32
    return %c0_i32, %c0_i32_0 : i32, i32
  }
  func.func @transform_7(%arg0: i32) -> (i32, i32) {
    %c0_i32 = arith.constant 0 : i32
    %c0_i32_0 = arith.constant 0 : i32
    %c0_i32_1 = arith.constant 0 : i32
    return %c0_i32, %c0_i32_0 : i32, i32
  }
  func.func @transform_8(%arg0: i32) -> (i32, i32) {
    %c0_i32 = arith.constant 0 : i32
    %c0_i32_0 = arith.constant 0 : i32
    %c0_i32_1 = arith.constant 0 : i32
    return %c0_i32, %c0_i32_0 : i32, i32
  }
  func.func @transform_9(%arg0: i32) -> (i32, i32) {
    %c0_i32 = arith.constant 0 : i32
    %c0_i32_0 = arith.constant 0 : i32
    return %arg0, %c0_i32 : i32, i32
  }
}

</mosaic_0001>

<bundles_post_ra>
// kernel: rnn_forward.1
= control target key start
LH: loop header
LB: loop body
LE: loop exit
PB: predicated region body
PF: predicated region fallthrough
CT: control target
= control target key end

     0   :  { %s1714_s0 = inlined_call_operand.vmem [shape: f32[8,8], index: 0, kind: input, shape index: {}]   ;;  %s1715_s1 = inlined_call_operand.vmem [shape: f32[1,8], index: 1, kind: input, shape index: {}]   ;;  %s1716_s2 = inlined_call_operand.vmem [shape: f32[8,8], index: 2, kind: input, shape index: {}]   ;;  %s1717_s3 = inlined_call_operand.vmem [shape: f32[1,8], index: 3, kind: input, shape index: {}]   ;;  %s1718_s4 = inlined_call_operand.vmem [shape: bf16[8,128], index: 4, kind: input, shape index: {}]   ;;  %s1719_s5 = inlined_call_operand.hbm [shape: bf16[128,128], index: 5, kind: input, shape index: {}]   ;;  %s1720_s6 = inlined_call_operand.vmem [shape: f32[1,128], index: 6, kind: input, shape index: {}]   ;;  %s1721_s7 = inlined_call_operand.vmem [shape: f32[1,128], index: 7, kind: input, shape index: {}]   ;;  %s1722_s8 = inlined_call_operand.<no memory space> [shape: f32[1,1], index: 8, kind: input, shape index: {}]   ;;  %s1723_s9 = inlined_call_operand.vmem [shape: f32[8,128], index: 9, kind: output, shape index: {}]  }
   0x1   :  { %v14_v0 = vstv %s1722_s8 }
   0x2   :  { %15 = vst [vmem:[#allocation2] sm:$0x1] %v14_v0 }
   0x3   :  { %16 = vsyncpa [#allocation4], 0  ;;  %s1285_s11 = smov [#allocation3]   ;;  %s1261_s15 = scalar_lea.hbm %s1719_s5, 1024 }
   0x4   :  { %s32_s12 = sshll.u32 %s1285_s11, 4  ;;  %p1262_p0 = scmp.ne.s32.totalorder %s1719_s5, %s1261_s15  ;;  %s33_s12 = int_to_ptr.vmem [resolvable:$true] %s32_s12 }
   0x5   :  { %p1265_p1 = scmp.lt.u32.totalorder %s1261_s15, %s1719_s5 }
   0x7   :  { %p1267_p2 = pnand %p1265_p1, %p1262_p0 }
   0x9   :  { %1270 = shalt.err (!%p1267_p2)
}
   0xa   :  { %s1271_s8 = scalar_lea.vmem %s33_s12, 1024  ;;  %p1276_p4 = scmp.lt.s32.totalorder %s33_s12, %s33_s12 }
   0xb   :  { %p1272_p3 = scmp.ne.s32.totalorder %s33_s12, %s1271_s8  ;;  %p1277_p5 = scmp.lt.s32.totalorder %s1271_s8, %s1271_s8 }
   0xd   :  { %p1278_p6 = por %p1277_p5, %p1276_p4 }
   0xf   :  { %p1279_p7 = pnand %p1278_p6, %p1272_p3 }
  0x11   :  { %1282 = shalt.err (!%p1279_p7)
}
  0x12   :  { %s1286_s20 = smov 64   ;;  %s1287_s21 = smov 4  }
  0x13   :  { %38 = dma.hbm_to_vmem [thread:$0]  %s1719_s5, 1024, %s33_s12, [#allocation4], %s1286_s20, %s1286_s20, %s1287_s21  }
  0x14   :  { %1283 = dma.done.wait [#allocation4], 1024  }
  0x15   :  { %1284 = vsyncadd [#allocation4], 4294966272  ;;  %v1288_v1 = vmov 0   ;;  %v1368_v2 = vld [vmem:[%s1714_s0] sm:$0xff]  ;;  %v1289_v3 = vmov 1   ;;  %v1290_v4 = vmov 3   ;;  %v72_v5 = vlaneseq }
  0x16   :  { %1178 = vset.pattern.permute.xlu0 %v1288_v1  ;;  %1180 = vset.pattern.permute.xlu1 %v1288_v1  ;;  %v50_v8 = vld [vmem:[%s1716_s2] sm:$0xff]  ;;  %v1291_v34 = vmov 2   ;;  %v1292_v35 = vmov 4   ;;  %vm397_vm0 = vcmask 64512   ;;  %v1293_v57 = vmov 0.0  }
  0x17   :  { %55 = vperm.xlu0 %1178, %v1368_v2   ;;  %v73_v6 = vshrl.u32 %v72_v5, 7  ;;  %v1382_v12 = vld [vmem:[%s1715_s1] ss:$0 sm:$0xff]  ;;  %v1426_v56 = vld [vmem:[#allocation3] sm:$0xff]   ;;  %1004 = vmatprep.subr.bf16.mxu1 %v1293_v57  ;;  %vm410_vm1 = vcmask 1043456   ;;  %vm1294_vm2 = vmmov 0  }
  0x18   :  { %v1389_v16 = vld [vmem:[%s1717_s3] ss:$0 sm:$0xff]  ;;  %1005 = vmatpush3.bf16.msra.mxu1 %v1426_v56  ;;  %1020 = vmatprep.mubr.msk.bf16.mxu1 %vm1294_vm2, %v1293_v57 }
  0x19   :  { %v74_v7 = vsub.s32 0, %v73_v6  ;;  %v80_v9 = vsub.s32 1, %v73_v6  ;;  %v86_v10 = vsub.s32 2, %v73_v6  ;;  %v92_v13 = vsub.s32 3, %v73_v6  ;;  %1006 = vmatprep.subr.bf16.mxu1 %v1293_v57 }
  0x1a   :  { %v98_v17 = vsub.s32 4, %v73_v6 }
  0x1b   :  { %1179 = vset.pattern.permute.xlu0 %v1289_v3  ;;  %v1377_v11 = vrot.slane %v50_v8, %v74_v7  ;;  %v1384_v14 = vrot.slane %v50_v8, %v80_v9  ;;  %v1393_v20 = vrot.slane %v50_v8, %v86_v10  ;;  %v1397_v23 = vrot.slane %v50_v8, %v92_v13 }
  0x1c   :  { %104 = vperm.xlu0 %1179, %v1368_v2   ;;  %v1400_v26 = vrot.slane %v50_v8, %v98_v17 }
  0x1d   :  { %v76_v19 = vmul.f32 0.0, %v1377_v11  ;;  %v82_v22 = vmul.f32 0.0, %v1384_v14  ;;  %v88_v25 = vmul.f32 0.0, %v1393_v20  ;;  %v94_v28 = vmul.f32 0.0, %v1397_v23 }
  0x1e   :  { %v100_v30 = vmul.f32 0.0, %v1400_v26 }
  0x20   :  { %1183 = vset.pattern.permute.xlu0 %v1290_v4 }
  0x96   :  { %v56_v15 = vpop.permute.xlu0 %55 }
  0x97   :  { %v64_v18 = vmul.f32 %v1382_v12, %v56_v15 }
  0x99   :  { %v71_v21 = vadd.f32 %v1389_v16, %v64_v18 }
  0x9b   :  { %v77_v24 = vadd.f32 %v76_v19, %v71_v21  ;;  %v105_v36 = vpop.permute.xlu0 %104 }
  0x9c   :  { %v107_v38 = vmul.f32 %v1382_v12, %v105_v36 }
  0x9d   :  { %v83_v27 = vadd.f32 %v82_v22, %v77_v24  ;;  %v1442_v22 = vld [vmem:[#allocation3 + $0x8] sm:$0xff]   ;;  %v1449_v24 = vld [vmem:[#allocation3 + $0x10] sm:$0xff]  }
  0x9e   :  { %v108_v39 = vadd.f32 %v1389_v16, %v107_v38  ;;  %1007 = vmatpush3.bf16.msra.mxu1 %v1442_v22 }
  0x9f   :  { %v89_v29 = vadd.f32 %v88_v25, %v83_v27  ;;  %1008 = vmatprep.subr.bf16.mxu1 %v1293_v57  ;;  %v1455_v25 = vld [vmem:[#allocation3 + $0x18] sm:$0xff]   ;;  %v1461_v27 = vld [vmem:[#allocation3 + $0x20] sm:$0xff]  }
  0xa1   :  { %v95_v31 = vadd.f32 %v94_v28, %v89_v29  ;;  %v1466_v28 = vld [vmem:[#allocation3 + $0x28] sm:$0xff]   ;;  %v369_v29 = vld [vmem:[%s1718_s4] sm:$0xf] }
  0xa2   :  { %1009 = vmatpush3.bf16.msra.mxu1 %v1449_v24  ;;  %1164 = vmatprep.subr.msk.bf16.mxu0 %vm410_vm1, %v369_v29 }
  0xa3   :  { %v101_v32 = vadd.f32 %v100_v30, %v95_v31  ;;  %1010 = vmatprep.subr.bf16.mxu1 %v1293_v57  ;;  %v412_v30 = vsel %vm410_vm1, %v369_v29, 0  ;;  %v1473_v31 = vld [vmem:[#allocation3 + $0x30] sm:$0xff]  }
  0xa4   :  { %995 = vmatpush3.bf16.msra.mxu0 %v412_v30 }
  0xa5   :  { %1229 = vtanh.f32 %v101_v32  ;;  %1024 = vmatprep.subr.bf16.mxu0 %v1293_v57  ;;  %v1479_v32 = vld [vmem:[#allocation3 + $0x38] sm:$0xff]  }
  0xa6   :  { %1011 = vmatpush3.bf16.msra.mxu1 %v1455_v25 }
  0xa7   :  { %1012 = vmatprep.subr.bf16.mxu1 %v1293_v57 }
  0xaa   :  { %1013 = vmatpush3.bf16.msra.mxu1 %v1461_v27 }
  0xab   :  { %1014 = vmatprep.subr.bf16.mxu1 %v1293_v57 }
  0xae   :  { %1015 = vmatpush3.bf16.msra.mxu1 %v1466_v28 }
  0xaf   :  { %v1230_v33 = vpop.eup %1229  ;;  %1016 = vmatprep.subr.bf16.mxu1 %v1293_v57 }
  0xb0   :  { %129 = vperm.xlu0 %1183, %v1230_v33   ;;  %111 = vperm.xlu1 %1180, %v1230_v33  }
  0xb2   :  { %1017 = vmatpush3.bf16.msra.mxu1 %v1473_v31 }
  0xb3   :  { %1018 = vmatprep.subr.bf16.mxu1 %v1293_v57 }
  0xb4   :  { %1181 = vset.pattern.permute.xlu1 %v1289_v3  ;;  %1186 = vset.pattern.permute.xlu0 %v1288_v1 }
  0xb5   :  { %117 = vperm.xlu1 %1181, %v1230_v33  }
  0xb6   :  { %1019 = vmatpush3.bf16.msra.mxu1 %v1479_v32 }
  0xb7   :  { %1044 = vmatprep.subr.bf16.mxu1 %v1293_v57 }
  0xb9   :  { %1182 = vset.pattern.permute.xlu1 %v1291_v34  ;;  %1021 = vmatmul.mubr.bf16.vlgmr.msra.gmra.mrb[0].mxu1 %v1288_v1 }
  0xba   :  { %123 = vperm.xlu1 %1182, %v1230_v33   ;;  %1045 = vmatpush3.bf16.msra.mxu1 %v1426_v56 }
  0xbb   :  { %1060 = vmatprep.mubr.msk.bf16.mxu1 %vm1294_vm2, %v1293_v57  ;;  %1046 = vmatprep.subr.bf16.mxu1 %v1293_v57 }
  0xbe   :  { %1184 = vset.pattern.permute.xlu1 %v1292_v35  ;;  %1047 = vmatpush3.bf16.msra.mxu1 %v1442_v22 }
  0xbf   :  { %135 = vperm.xlu1 %1184, %v1230_v33   ;;  %1048 = vmatprep.subr.bf16.mxu1 %v1293_v57 }
  0xc2   :  { %1049 = vmatpush3.bf16.msra.mxu1 %v1449_v24 }
  0xc3   :  { %1185 = vset.pattern.permute.xlu1 %v1291_v34  ;;  %1050 = vmatprep.subr.bf16.mxu1 %v1293_v57 }
  0xc4   :  { %142 = vperm.xlu1 %1185, %v1368_v2  }
  0xc6   :  { %1051 = vmatpush3.bf16.msra.mxu1 %v1455_v25 }
  0xc7   :  { %1052 = vmatprep.subr.bf16.mxu1 %v1293_v57 }
  0xc8   :  { %1187 = vset.pattern.permute.xlu1 %v1289_v3 }
  0xca   :  { %1053 = vmatpush3.bf16.msra.mxu1 %v1461_v27 }
  0xcb   :  { %1054 = vmatprep.subr.bf16.mxu1 %v1293_v57 }
  0xce   :  { %1055 = vmatpush3.bf16.msra.mxu1 %v1466_v28 }
  0xcf   :  { %1056 = vmatprep.subr.bf16.mxu1 %v1293_v57 }
  0xd2   :  { %1057 = vmatpush3.bf16.msra.mxu1 %v1473_v31 }
  0xd3   :  { %1058 = vmatprep.subr.bf16.mxu1 %v1293_v57 }
  0xd6   :  { %1059 = vmatpush3.bf16.msra.mxu1 %v1479_v32 }
  0xd7   :  { %1084 = vmatprep.subr.bf16.mxu1 %v1293_v57 }
 0x12f   :  { %v112_v37 = vpop.permute.xlu1 %111  ;;  %v130_v44 = vpop.permute.xlu0 %129 }
 0x130   :  { %v114_v40 = vmul.f32 %v112_v37, %v1377_v11  ;;  %v132_v48 = vmul.f32 %v130_v44, %v1397_v23 }
 0x132   :  { %v115_v43 = vadd.f32 %v114_v40, %v108_v39 }
 0x134   :  { %v118_v41 = vpop.permute.xlu1 %117 }
 0x135   :  { %v120_v42 = vmul.f32 %v118_v41, %v1384_v14 }
 0x137   :  { %v121_v46 = vadd.f32 %v120_v42, %v115_v43 }
 0x139   :  { %v124_v45 = vpop.permute.xlu1 %123 }
 0x13a   :  { %v126_v47 = vmul.f32 %v124_v45, %v1393_v20 }
 0x13c   :  { %v127_v49 = vadd.f32 %v126_v47, %v121_v46 }
 0x13e   :  { %v133_v50 = vadd.f32 %v132_v48, %v127_v49  ;;  %v136_v51 = vpop.permute.xlu1 %135 }
 0x13f   :  { %v138_v52 = vmul.f32 %v136_v51, %v1400_v26 }
 0x141   :  { %v139_v53 = vadd.f32 %v138_v52, %v133_v50 }
 0x143   :  { %1231 = vtanh.f32 %v139_v53  ;;  %v143_v58 = vpop.permute.xlu1 %142 }
 0x144   :  { %v145_v59 = vmul.f32 %v1382_v12, %v143_v58 }
 0x146   :  { %v146_v62 = vadd.f32 %v1389_v16, %v145_v59 }
 0x14d   :  { %v1232_v54 = vpop.eup %1231 }
 0x14e   :  { %155 = vperm.xlu1 %1187, %v1232_v54   ;;  %149 = vperm.xlu0 %1186, %v1232_v54   ;;  %v387_v55 = vpack.c.bf16 %v1232_v54, %v1230_v33 }
 0x150   :  { %996 = vmatprep.mubr.msk.bf16.mxu0 %vm397_vm0, %v387_v55  ;;  %v1295_v55 = vmov 5  }
 0x152   :  { %1188 = vset.pattern.permute.xlu1 %v1291_v34  ;;  %1189 = vset.pattern.permute.xlu0 %v1290_v4 }
 0x153   :  { %161 = vperm.xlu1 %1188, %v1232_v54   ;;  %167 = vperm.xlu0 %1189, %v1232_v54  }
 0x157   :  { %1190 = vset.pattern.permute.xlu1 %v1292_v35  ;;  %1192 = vset.pattern.permute.xlu0 %v1288_v1 }
 0x158   :  { %173 = vperm.xlu1 %1190, %v1232_v54  }
 0x15c   :  { %1191 = vset.pattern.permute.xlu1 %v1290_v4 }
 0x15d   :  { %180 = vperm.xlu1 %1191, %v1368_v2  }
 0x161   :  { %1193 = vset.pattern.permute.xlu1 %v1289_v3 }
 0x18c   :  { %v561_v58 = vpop.f32.mrb[0].mxu1 }
 0x18d   :  { %v1022_v59 = vpop.f32.mrb[1].mxu1 }
 0x1cd   :  { %v150_v60 = vpop.permute.xlu0 %149  ;;  %v156_v61 = vpop.permute.xlu1 %155 }
 0x1ce   :  { %v152_v63 = vmul.f32 %v150_v60, %v1377_v11  ;;  %v158_v5 = vmul.f32 %v156_v61, %v1384_v14  ;;  %v564_v60 = vpop.f32.mrb[2].mxu1 }
 0x1cf   :  { %v1023_v61 = vpop.f32.mrb[3].mxu1 }
 0x1d0   :  { %v153_v0 = vadd.f32 %v152_v63, %v146_v62 }
 0x1d2   :  { %v159_v6 = vadd.f32 %v158_v5, %v153_v0  ;;  %v168_v7 = vpop.permute.xlu0 %167  ;;  %v162_v8 = vpop.permute.xlu1 %161 }
 0x1d3   :  { %v164_v9 = vmul.f32 %v162_v8, %v1393_v20  ;;  %v170_v10 = vmul.f32 %v168_v7, %v1397_v23 }
 0x1d5   :  { %v165_v13 = vadd.f32 %v164_v9, %v159_v6 }
 0x1d7   :  { %v171_v15 = vadd.f32 %v170_v10, %v165_v13  ;;  %v174_v17 = vpop.permute.xlu1 %173 }
 0x1d8   :  { %v176_v18 = vmul.f32 %v174_v17, %v1400_v26 }
 0x1da   :  { %v177_v19 = vadd.f32 %v176_v18, %v171_v15 }
 0x1dc   :  { %1233 = vtanh.f32 %v177_v19  ;;  %v181_v33 = vpop.permute.xlu1 %180 }
 0x1dd   :  { %v183_v36 = vmul.f32 %v1382_v12, %v181_v33 }
 0x1df   :  { %v184_v39 = vadd.f32 %v1389_v16, %v183_v36 }
 0x1e6   :  { %v1438_v21 = vpop.eup %1233 }
 0x1e7   :  { %193 = vperm.xlu1 %1193, %v1438_v21   ;;  %187 = vperm.xlu0 %1192, %v1438_v21  }
 0x1eb   :  { %1194 = vset.pattern.permute.xlu1 %v1291_v34  ;;  %1195 = vset.pattern.permute.xlu0 %v1290_v4 }
 0x1ec   :  { %199 = vperm.xlu1 %1194, %v1438_v21   ;;  %205 = vperm.xlu0 %1195, %v1438_v21  }
 0x1f0   :  { %1196 = vset.pattern.permute.xlu1 %v1292_v35  ;;  %1197 = vset.pattern.permute.xlu0 %v1288_v1 }
 0x1f1   :  { %211 = vperm.xlu1 %1196, %v1438_v21  }
 0x1f5   :  { %218 = vperm.xlu1 %1196, %v1368_v2  }
 0x1f9   :  { %1198 = vset.pattern.permute.xlu1 %v1289_v3 }
 0x266   :  { %v188_v37 = vpop.permute.xlu0 %187  ;;  %v194_v38 = vpop.permute.xlu1 %193 }
 0x267   :  { %v190_v40 = vmul.f32 %v188_v37, %v1377_v11  ;;  %v196_v42 = vmul.f32 %v194_v38, %v1384_v14  ;;  %v1296_v37 = vmov 6   ;;  %v1551_v38 = vld [vmem:[%s1720_s6] ss:$0 sm:$0xff] }
 0x269   :  { %v191_v41 = vadd.f32 %v190_v40, %v184_v39 }
 0x26b   :  { %v197_v43 = vadd.f32 %v196_v42, %v191_v41  ;;  %v206_v44 = vpop.permute.xlu0 %205  ;;  %v200_v45 = vpop.permute.xlu1 %199 }
 0x26c   :  { %v202_v46 = vmul.f32 %v200_v45, %v1393_v20  ;;  %v208_v47 = vmul.f32 %v206_v44, %v1397_v23 }
 0x26e   :  { %v203_v48 = vadd.f32 %v202_v46, %v197_v43 }
 0x270   :  { %v209_v49 = vadd.f32 %v208_v47, %v203_v48  ;;  %v212_v50 = vpop.permute.xlu1 %211 }
 0x271   :  { %v214_v51 = vmul.f32 %v212_v50, %v1400_v26 }
 0x273   :  { %v215_v52 = vadd.f32 %v214_v51, %v209_v49 }
 0x274   :  { %v219_v62 = vpop.permute.xlu1 %218 }
 0x275   :  { %1235 = vtanh.f32 %v215_v52  ;;  %v221_v63 = vmul.f32 %v1382_v12, %v219_v62 }
 0x277   :  { %v222_v6 = vadd.f32 %v1389_v16, %v221_v63 }
 0x27f   :  { %v1236_v53 = vpop.eup %1235 }
 0x280   :  { %231 = vperm.xlu1 %1198, %v1236_v53   ;;  %225 = vperm.xlu0 %1197, %v1236_v53   ;;  %v388_v54 = vpack.c.bf16 %v1236_v53, %v1438_v21 }
 0x282   :  { %997 = vmatmul.mubr.msk.bf16.vlgmr.msra.gmra.mrb[0].mxu0 %vm397_vm0, %v388_v54 }
 0x283   :  { %1025 = vmatpush3.bf16.msra.mxu0 %v1426_v56 }
 0x284   :  { %1199 = vset.pattern.permute.xlu1 %v1291_v34  ;;  %1200 = vset.pattern.permute.xlu0 %v1290_v4 }
 0x285   :  { %237 = vperm.xlu1 %1199, %v1236_v53   ;;  %243 = vperm.xlu0 %1200, %v1236_v53  }
 0x286   :  { %1026 = vmatprep.subr.bf16.mxu0 %v1293_v57 }
 0x287   :  { %1027 = vmatpush3.bf16.msra.mxu0 %v1442_v22 }
 0x288   :  { %1028 = vmatprep.subr.bf16.mxu0 %v1293_v57 }
 0x289   :  { %1201 = vset.pattern.permute.xlu1 %v1292_v35  ;;  %1203 = vset.pattern.permute.xlu0 %v1288_v1 }
 0x28a   :  { %249 = vperm.xlu1 %1201, %v1236_v53  }
 0x28b   :  { %1029 = vmatpush3.bf16.msra.mxu0 %v1449_v24 }
 0x28c   :  { %1030 = vmatprep.subr.bf16.mxu0 %v1293_v57 }
 0x28e   :  { %1202 = vset.pattern.permute.xlu1 %v1295_v55 }
 0x28f   :  { %1031 = vmatpush3.bf16.msra.mxu0 %v1455_v25  ;;  %256 = vperm.xlu1 %1202, %v1368_v2  }
 0x290   :  { %1032 = vmatprep.subr.bf16.mxu0 %v1293_v57 }
 0x293   :  { %1033 = vmatpush3.bf16.msra.mxu0 %v1461_v27  ;;  %1204 = vset.pattern.permute.xlu1 %v1289_v3 }
 0x294   :  { %1034 = vmatprep.subr.bf16.mxu0 %v1293_v57 }
 0x297   :  { %1035 = vmatpush3.bf16.msra.mxu0 %v1466_v28 }
 0x298   :  { %1036 = vmatprep.subr.bf16.mxu0 %v1293_v57 }
 0x29b   :  { %1037 = vmatpush3.bf16.msra.mxu0 %v1473_v31 }
 0x29c   :  { %1038 = vmatprep.subr.bf16.mxu0 %v1293_v57 }
 0x29f   :  { %1039 = vmatpush3.bf16.msra.mxu0 %v1479_v32 }
 0x2a0   :  { %1064 = vmatprep.subr.bf16.mxu0 %v1293_v57 }
 0x2ff   :  { %v226_v0 = vpop.permute.xlu0 %225  ;;  %v232_v5 = vpop.permute.xlu1 %231 }
 0x300   :  { %v228_v7 = vmul.f32 %v226_v0, %v1377_v11  ;;  %v234_v9 = vmul.f32 %v232_v5, %v1384_v14 }
 0x302   :  { %v229_v8 = vadd.f32 %v228_v7, %v222_v6  ;;  %v1297_v7 = vmov 7  }
 0x304   :  { %v235_v10 = vadd.f32 %v234_v9, %v229_v8  ;;  %v244_v13 = vpop.permute.xlu0 %243  ;;  %v238_v15 = vpop.permute.xlu1 %237 }
 0x305   :  { %v240_v17 = vmul.f32 %v238_v15, %v1393_v20  ;;  %v246_v18 = vmul.f32 %v244_v13, %v1397_v23 }
 0x307   :  { %v241_v19 = vadd.f32 %v240_v17, %v235_v10 }
 0x309   :  { %v247_v21 = vadd.f32 %v246_v18, %v241_v19  ;;  %v250_v29 = vpop.permute.xlu1 %249 }
 0x30a   :  { %v252_v30 = vmul.f32 %v250_v29, %v1400_v26 }
 0x30c   :  { %v253_v33 = vadd.f32 %v252_v30, %v247_v21 }
 0x30e   :  { %1237 = vtanh.f32 %v253_v33  ;;  %v257_v45 = vpop.permute.xlu1 %256 }
 0x30f   :  { %v259_v46 = vmul.f32 %v1382_v12, %v257_v45 }
 0x311   :  { %v260_v49 = vadd.f32 %v1389_v16, %v259_v46 }
 0x318   :  { %v1238_v36 = vpop.eup %1237 }
 0x319   :  { %269 = vperm.xlu1 %1204, %v1238_v36   ;;  %263 = vperm.xlu0 %1203, %v1238_v36  }
 0x31d   :  { %1205 = vset.pattern.permute.xlu1 %v1291_v34  ;;  %1206 = vset.pattern.permute.xlu0 %v1290_v4 }
 0x31e   :  { %275 = vperm.xlu1 %1205, %v1238_v36   ;;  %281 = vperm.xlu0 %1206, %v1238_v36  }
 0x322   :  { %1207 = vset.pattern.permute.xlu1 %v1292_v35  ;;  %1209 = vset.pattern.permute.xlu0 %v1288_v1 }
 0x323   :  { %287 = vperm.xlu1 %1207, %v1238_v36  }
 0x327   :  { %1208 = vset.pattern.permute.xlu1 %v1296_v37 }
 0x328   :  { %294 = vperm.xlu1 %1208, %v1368_v2  }
 0x32c   :  { %1210 = vset.pattern.permute.xlu1 %v1289_v3 }
 0x355   :  { %v1553_v39 = vpop.f32.mrb[0].mxu0 }
 0x356   :  { %v448_v40 = vpop.f32.mrb[1].mxu0 }
 0x357   :  { %v449_v41 = vadd.f32 %v1551_v38, %v448_v40  ;;  %v1556_v42 = vpop.f32.mrb[2].mxu0 }
 0x358   :  { %v1558_v43 = vpop.f32.mrb[3].mxu0 }
 0x359   :  { %v1560_v44 = vadd.f32 %v561_v58, %v449_v41 }
 0x398   :  { %v264_v47 = vpop.permute.xlu0 %263  ;;  %v270_v48 = vpop.permute.xlu1 %269 }
 0x399   :  { %v266_v50 = vmul.f32 %v264_v47, %v1377_v11  ;;  %v272_v52 = vmul.f32 %v270_v48, %v1384_v14 }
 0x39b   :  { %v267_v51 = vadd.f32 %v266_v50, %v260_v49 }
 0x39d   :  { %v273_v53 = vadd.f32 %v272_v52, %v267_v51  ;;  %v282_v54 = vpop.permute.xlu0 %281  ;;  %v276_v55 = vpop.permute.xlu1 %275 }
 0x39e   :  { %v278_v59 = vmul.f32 %v276_v55, %v1393_v20  ;;  %v284_v58 = vmul.f32 %v282_v54, %v1397_v23 }
 0x3a0   :  { %v279_v60 = vadd.f32 %v278_v59, %v273_v53 }
 0x3a2   :  { %v285_v61 = vadd.f32 %v284_v58, %v279_v60  ;;  %v288_v62 = vpop.permute.xlu1 %287 }
 0x3a3   :  { %v290_v63 = vmul.f32 %v288_v62, %v1400_v26  ;;  %v452_v62 = vadd.f32 %v1551_v38, %v1558_v43  ;;  %v457_v43 = vadd.f32 %v1553_v39, %v1551_v38  ;;  %v460_v39 = vadd.f32 %v1556_v42, %v1551_v38 }
 0x3a5   :  { %v291_v0 = vadd.f32 %v290_v63, %v285_v61 }
 0x3a7   :  { %1239 = vtanh.f32 %v291_v0  ;;  %v295_v8 = vpop.permute.xlu1 %294 }
 0x3a8   :  { %v297_v9 = vmul.f32 %v1382_v12, %v295_v8 }
 0x3aa   :  { %v298_v15 = vadd.f32 %v1389_v16, %v297_v9 }
 0x3b1   :  { %v1240_v5 = vpop.eup %1239 }
 0x3b2   :  { %307 = vperm.xlu1 %1210, %v1240_v5   ;;  %301 = vperm.xlu0 %1209, %v1240_v5   ;;  %v389_v6 = vpack.c.bf16 %v1240_v5, %v1238_v36 }
 0x3b4   :  { %1000 = vmatprep.mubr.msk.bf16.mxu0 %vm397_vm0, %v389_v6 }
 0x3b6   :  { %1211 = vset.pattern.permute.xlu1 %v1291_v34  ;;  %1212 = vset.pattern.permute.xlu0 %v1290_v4 }
 0x3b7   :  { %313 = vperm.xlu1 %1211, %v1240_v5   ;;  %319 = vperm.xlu0 %1212, %v1240_v5  }
 0x3bb   :  { %1213 = vset.pattern.permute.xlu1 %v1292_v35  ;;  %1215 = vset.pattern.permute.xlu0 %v1288_v1 }
 0x3bc   :  { %325 = vperm.xlu1 %1213, %v1240_v5  }
 0x3c0   :  { %1214 = vset.pattern.permute.xlu1 %v1297_v7 }
 0x3c1   :  { %332 = vperm.xlu1 %1214, %v1368_v2  }
 0x3c5   :  { %1216 = vset.pattern.permute.xlu1 %v1289_v3 }
 0x431   :  { %v302_v10 = vpop.permute.xlu0 %301  ;;  %v308_v13 = vpop.permute.xlu1 %307 }
 0x432   :  { %v304_v17 = vmul.f32 %v302_v10, %v1377_v11  ;;  %v310_v19 = vmul.f32 %v308_v13, %v1384_v14 }
 0x434   :  { %v305_v18 = vadd.f32 %v304_v17, %v298_v15 }
 0x436   :  { %v311_v21 = vadd.f32 %v310_v19, %v305_v18  ;;  %v320_v29 = vpop.permute.xlu0 %319  ;;  %v314_v30 = vpop.permute.xlu1 %313 }
 0x437   :  { %v316_v33 = vmul.f32 %v314_v30, %v1393_v20  ;;  %v322_v2 = vmul.f32 %v320_v29, %v1397_v23 }
 0x439   :  { %v317_v3 = vadd.f32 %v316_v33, %v311_v21 }
 0x43b   :  { %v323_v36 = vadd.f32 %v322_v2, %v317_v3  ;;  %v326_v37 = vpop.permute.xlu1 %325 }
 0x43c   :  { %v328_v40 = vmul.f32 %v326_v37, %v1400_v26 }
 0x43e   :  { %v329_v41 = vadd.f32 %v328_v40, %v323_v36 }
 0x440   :  { %1241 = vtanh.f32 %v329_v41  ;;  %v333_v46 = vpop.permute.xlu1 %332 }
 0x441   :  { %v335_v47 = vmul.f32 %v1382_v12, %v333_v46 }
 0x443   :  { %v336_v50 = vadd.f32 %v1389_v16, %v335_v47 }
 0x44a   :  { %v1242_v45 = vpop.eup %1241 }
 0x44b   :  { %345 = vperm.xlu1 %1216, %v1242_v45   ;;  %339 = vperm.xlu0 %1215, %v1242_v45  }
 0x44f   :  { %1217 = vset.pattern.permute.xlu1 %v1291_v34  ;;  %1218 = vset.pattern.permute.xlu0 %v1290_v4 }
 0x450   :  { %351 = vperm.xlu1 %1217, %v1242_v45   ;;  %357 = vperm.xlu0 %1218, %v1242_v45  }
 0x454   :  { %1219 = vset.pattern.permute.xlu1 %v1292_v35  ;;  %1220 = vset.pattern.permute.xlu0 %v1288_v1 }
 0x455   :  { %363 = vperm.xlu1 %1219, %v1242_v45  }
 0x4ca   :  { %v340_v48 = vpop.permute.xlu0 %339  ;;  %v346_v49 = vpop.permute.xlu1 %345 }
 0x4cb   :  { %v342_v51 = vmul.f32 %v340_v48, %v1377_v11  ;;  %v348_v34 = vmul.f32 %v346_v49, %v1384_v14 }
 0x4cd   :  { %v343_v52 = vadd.f32 %v342_v51, %v336_v50 }
 0x4cf   :  { %v349_v4 = vadd.f32 %v348_v34, %v343_v52  ;;  %v358_v53 = vpop.permute.xlu0 %357  ;;  %v352_v54 = vpop.permute.xlu1 %351 }
 0x4d0   :  { %v354_v35 = vmul.f32 %v352_v54, %v1393_v20  ;;  %v360_v1 = vmul.f32 %v358_v53, %v1397_v23 }
 0x4d2   :  { %v355_v55 = vadd.f32 %v354_v35, %v349_v4 }
 0x4d4   :  { %v361_v59 = vadd.f32 %v360_v1, %v355_v55  ;;  %v364_v58 = vpop.permute.xlu1 %363 }
 0x4d5   :  { %v366_v12 = vmul.f32 %v364_v58, %v1400_v26 }
 0x4d7   :  { %v367_v60 = vadd.f32 %v366_v12, %v361_v59 }
 0x4d9   :  { %1243 = vtanh.f32 %v367_v60  ;;  %v915_v60 = vld [vmem:[%s1721_s7] ss:$0 sm:$0xff] }
 0x4da   :  { %1245 = vtanh.f32 %v1560_v44 }
 0x4e3   :  { %v1244_v11 = vpop.eup %1243 }
 0x4e4   :  { %v390_v16 = vpack.c.bf16 %v1244_v11, %v1242_v45  ;;  %v1246_v14 = vpop.eup %1245 }
 0x4e5   :  { %v569_v20 = vpack.c.bf16 %v1246_v14, %v1246_v14  ;;  %v916_v14 = vld [vmem:[#allocation2] ss:$0 sm:$0xff] }
 0x4e6   :  { %1001 = vmatmul.mubr.msk.bf16.gmra.mrb[4].mxu0 %vm397_vm0, %v390_v16 }
 0x4e7   :  { %1040 = vmatprep.mubr.msk.bf16.mxu0 %vm1294_vm2, %v1293_v57 }
 0x4ee   :  { %1041 = vmatmul.mubr.bf16.vlgmr.msra.gmra.mrb[8].mxu0 %v569_v20 }
 0x4ef   :  { %1065 = vmatpush3.bf16.msra.mxu0 %v1426_v56  ;;  %1080 = vmatprep.mubr.msk.bf16.mxu0 %vm1294_vm2, %v1293_v57 }
 0x4f0   :  { %1066 = vmatprep.subr.bf16.mxu0 %v1293_v57 }
 0x4f3   :  { %1067 = vmatpush3.bf16.msra.mxu0 %v1442_v22 }
 0x4f4   :  { %1068 = vmatprep.subr.bf16.mxu0 %v1293_v57 }
 0x4f7   :  { %1069 = vmatpush3.bf16.msra.mxu0 %v1449_v24 }
 0x4f8   :  { %1070 = vmatprep.subr.bf16.mxu0 %v1293_v57 }
 0x4fb   :  { %1071 = vmatpush3.bf16.msra.mxu0 %v1455_v25 }
 0x4fc   :  { %1072 = vmatprep.subr.bf16.mxu0 %v1293_v57 }
 0x4ff   :  { %1073 = vmatpush3.bf16.msra.mxu0 %v1461_v27 }
 0x500   :  { %1074 = vmatprep.subr.bf16.mxu0 %v1293_v57 }
 0x503   :  { %1075 = vmatpush3.bf16.msra.mxu0 %v1466_v28 }
 0x504   :  { %1076 = vmatprep.subr.bf16.mxu0 %v1293_v57 }
 0x507   :  { %1077 = vmatpush3.bf16.msra.mxu0 %v1473_v31 }
 0x508   :  { %1078 = vmatprep.subr.bf16.mxu0 %v1293_v57 }
 0x50b   :  { %1079 = vmatpush3.bf16.msra.mxu0 %v1479_v32 }
 0x50c   :  { %1104 = vmatprep.subr.bf16.mxu0 %v1293_v57 }
 0x5b9   :  { %v1616_v23 = vpop.f32.mrb[4].mxu0 }
 0x5ba   :  { %v1618_v26 = vpop.f32.mrb[5].mxu0 }
 0x5bb   :  { %v1620_v44 = vpop.f32.mrb[6].mxu0  ;;  %v465_v42 = vadd.f32 %v1551_v38, %v1618_v26 }
 0x5bc   :  { %v1622_v61 = vpop.f32.mrb[7].mxu0  ;;  %v476_v35 = vadd.f32 %v1620_v44, %v1551_v38 }
 0x5c1   :  { %v604_v63 = vpop.f32.mrb[8].mxu0 }
 0x5c2   :  { %v610_v0 = vadd.f32 %v604_v63, %v452_v62  ;;  %v1042_v5 = vpop.f32.mrb[9].mxu0 }
 0x5c3   :  { %v607_v6 = vpop.f32.mrb[10].mxu0 }
 0x5c4   :  { %1247 = vtanh.f32 %v610_v0  ;;  %v1043_v7 = vpop.f32.mrb[11].mxu0 }
 0x5ce   :  { %v1248_v8 = vpop.eup %1247 }
 0x5cf   :  { %v612_v9 = vpack.c.bf16 %v1248_v8, %v1248_v8 }
 0x5d1   :  { %1061 = vmatmul.mubr.bf16.vlgmr.msra.gmra.mrb[4].mxu1 %v612_v9 }
 0x5d2   :  { %1085 = vmatpush3.bf16.msra.mxu1 %v1426_v56  ;;  %1100 = vmatprep.mubr.msk.bf16.mxu1 %vm1294_vm2, %v1293_v57 }
 0x5d3   :  { %1086 = vmatprep.subr.bf16.mxu1 %v1293_v57 }
 0x5d6   :  { %1087 = vmatpush3.bf16.msra.mxu1 %v1442_v22 }
 0x5d7   :  { %1088 = vmatprep.subr.bf16.mxu1 %v1293_v57 }
 0x5da   :  { %1089 = vmatpush3.bf16.msra.mxu1 %v1449_v24 }
 0x5db   :  { %1090 = vmatprep.subr.bf16.mxu1 %v1293_v57 }
 0x5de   :  { %1091 = vmatpush3.bf16.msra.mxu1 %v1455_v25 }
 0x5df   :  { %1092 = vmatprep.subr.bf16.mxu1 %v1293_v57 }
 0x5e2   :  { %1093 = vmatpush3.bf16.msra.mxu1 %v1461_v27 }
 0x5e3   :  { %1094 = vmatprep.subr.bf16.mxu1 %v1293_v57 }
 0x5e6   :  { %1095 = vmatpush3.bf16.msra.mxu1 %v1466_v28 }
 0x5e7   :  { %1096 = vmatprep.subr.bf16.mxu1 %v1293_v57 }
 0x5ea   :  { %1097 = vmatpush3.bf16.msra.mxu1 %v1473_v31 }
 0x5eb   :  { %1098 = vmatprep.subr.bf16.mxu1 %v1293_v57 }
 0x5ee   :  { %1099 = vmatpush3.bf16.msra.mxu1 %v1479_v32 }
 0x5ef   :  { %1124 = vmatprep.subr.bf16.mxu1 %v1293_v57 }
 0x6a4   :  { %v647_v10 = vpop.f32.mrb[4].mxu1 }
 0x6a5   :  { %v653_v13 = vadd.f32 %v647_v10, %v457_v43  ;;  %v1062_v15 = vpop.f32.mrb[5].mxu1 }
 0x6a6   :  { %v650_v17 = vpop.f32.mrb[6].mxu1 }
 0x6a7   :  { %1249 = vtanh.f32 %v653_v13  ;;  %v1063_v18 = vpop.f32.mrb[7].mxu1 }
 0x6b1   :  { %v1250_v19 = vpop.eup %1249 }
 0x6b2   :  { %v655_v21 = vpack.c.bf16 %v1250_v19, %v1250_v19 }
 0x6b4   :  { %1081 = vmatmul.mubr.bf16.vlgmr.msra.gmra.mrb[12].mxu0 %v655_v21 }
 0x6b5   :  { %1105 = vmatpush3.bf16.msra.mxu0 %v1426_v56  ;;  %1120 = vmatprep.mubr.msk.bf16.mxu0 %vm1294_vm2, %v1293_v57 }
 0x6b6   :  { %1106 = vmatprep.subr.bf16.mxu0 %v1293_v57 }
 0x6b9   :  { %1107 = vmatpush3.bf16.msra.mxu0 %v1442_v22 }
 0x6ba   :  { %1108 = vmatprep.subr.bf16.mxu0 %v1293_v57 }
 0x6bd   :  { %1109 = vmatpush3.bf16.msra.mxu0 %v1449_v24 }
 0x6be   :  { %1110 = vmatprep.subr.bf16.mxu0 %v1293_v57 }
 0x6c1   :  { %1111 = vmatpush3.bf16.msra.mxu0 %v1455_v25 }
 0x6c2   :  { %1112 = vmatprep.subr.bf16.mxu0 %v1293_v57 }
 0x6c5   :  { %1113 = vmatpush3.bf16.msra.mxu0 %v1461_v27 }
 0x6c6   :  { %1114 = vmatprep.subr.bf16.mxu0 %v1293_v57 }
 0x6c9   :  { %1115 = vmatpush3.bf16.msra.mxu0 %v1466_v28 }
 0x6ca   :  { %1116 = vmatprep.subr.bf16.mxu0 %v1293_v57 }
 0x6cd   :  { %1117 = vmatpush3.bf16.msra.mxu0 %v1473_v31 }
 0x6ce   :  { %1118 = vmatprep.subr.bf16.mxu0 %v1293_v57 }
 0x6d1   :  { %1119 = vmatpush3.bf16.msra.mxu0 %v1479_v32 }
 0x6d2   :  { %1144 = vmatprep.subr.bf16.mxu0 %v1293_v57 }
 0x787   :  { %v690_v29 = vpop.f32.mrb[12].mxu0 }
 0x788   :  { %v696_v30 = vadd.f32 %v690_v29, %v460_v39  ;;  %v1082_v33 = vpop.f32.mrb[13].mxu0 }
 0x789   :  { %v693_v2 = vpop.f32.mrb[14].mxu0 }
 0x78a   :  { %1251 = vtanh.f32 %v696_v30  ;;  %v1083_v3 = vpop.f32.mrb[15].mxu0 }
 0x794   :  { %v1252_v36 = vpop.eup %1251 }
 0x795   :  { %v698_v37 = vpack.c.bf16 %v1252_v36, %v1252_v36 }
 0x797   :  { %1101 = vmatmul.mubr.bf16.vlgmr.msra.gmra.mrb[8].mxu1 %v698_v37 }
 0x798   :  { %1125 = vmatpush3.bf16.msra.mxu1 %v1426_v56  ;;  %1140 = vmatprep.mubr.msk.bf16.mxu1 %vm1294_vm2, %v1293_v57 }
 0x799   :  { %1126 = vmatprep.subr.bf16.mxu1 %v1293_v57 }
 0x79c   :  { %1127 = vmatpush3.bf16.msra.mxu1 %v1442_v22 }
 0x79d   :  { %1128 = vmatprep.subr.bf16.mxu1 %v1293_v57 }
 0x7a0   :  { %1129 = vmatpush3.bf16.msra.mxu1 %v1449_v24 }
 0x7a1   :  { %1130 = vmatprep.subr.bf16.mxu1 %v1293_v57 }
 0x7a4   :  { %1131 = vmatpush3.bf16.msra.mxu1 %v1455_v25 }
 0x7a5   :  { %1132 = vmatprep.subr.bf16.mxu1 %v1293_v57 }
 0x7a8   :  { %1133 = vmatpush3.bf16.msra.mxu1 %v1461_v27 }
 0x7a9   :  { %1134 = vmatprep.subr.bf16.mxu1 %v1293_v57 }
 0x7ac   :  { %1135 = vmatpush3.bf16.msra.mxu1 %v1466_v28 }
 0x7ad   :  { %1136 = vmatprep.subr.bf16.mxu1 %v1293_v57 }
 0x7b0   :  { %1137 = vmatpush3.bf16.msra.mxu1 %v1473_v31 }
 0x7b1   :  { %1138 = vmatprep.subr.bf16.mxu1 %v1293_v57 }
 0x7b4   :  { %1139 = vmatpush3.bf16.msra.mxu1 %v1479_v32 }
 0x86a   :  { %v733_v40 = vpop.f32.mrb[8].mxu1 }
 0x86b   :  { %v739_v41 = vadd.f32 %v733_v40, %v465_v42  ;;  %v1102_v45 = vpop.f32.mrb[9].mxu1 }
 0x86c   :  { %v736_v46 = vpop.f32.mrb[10].mxu1 }
 0x86d   :  { %1253 = vtanh.f32 %v739_v41  ;;  %v1103_v47 = vpop.f32.mrb[11].mxu1 }
 0x877   :  { %v1254_v48 = vpop.eup %1253 }
 0x878   :  { %v741_v49 = vpack.c.bf16 %v1254_v48, %v1254_v48 }
 0x87a   :  { %1121 = vmatmul.mubr.bf16.vlgmr.msra.gmra.mrb[16].mxu0 %v741_v49 }
 0x87b   :  { %1145 = vmatpush3.bf16.msra.mxu0 %v1426_v56  ;;  %1160 = vmatprep.mubr.msk.bf16.mxu0 %vm1294_vm2, %v1293_v57  ;;  %v468_v56 = vadd.f32 %v1551_v38, %v1622_v61 }
 0x87c   :  { %1146 = vmatprep.subr.bf16.mxu0 %v1293_v57 }
 0x87f   :  { %1147 = vmatpush3.bf16.msra.mxu0 %v1442_v22 }
 0x880   :  { %1148 = vmatprep.subr.bf16.mxu0 %v1293_v57 }
 0x883   :  { %1149 = vmatpush3.bf16.msra.mxu0 %v1449_v24 }
 0x884   :  { %1150 = vmatprep.subr.bf16.mxu0 %v1293_v57 }
 0x887   :  { %1151 = vmatpush3.bf16.msra.mxu0 %v1455_v25 }
 0x888   :  { %1152 = vmatprep.subr.bf16.mxu0 %v1293_v57 }
 0x88b   :  { %1153 = vmatpush3.bf16.msra.mxu0 %v1461_v27 }
 0x88c   :  { %1154 = vmatprep.subr.bf16.mxu0 %v1293_v57 }
 0x88f   :  { %1155 = vmatpush3.bf16.msra.mxu0 %v1466_v28  ;;  %v473_v28 = vadd.f32 %v1616_v23, %v1551_v38 }
 0x890   :  { %1156 = vmatprep.subr.bf16.mxu0 %v1293_v57 }
 0x893   :  { %1157 = vmatpush3.bf16.msra.mxu0 %v1473_v31 }
 0x894   :  { %1158 = vmatprep.subr.bf16.mxu0 %v1293_v57 }
 0x897   :  { %1159 = vmatpush3.bf16.msra.mxu0 %v1479_v32 }
 0x94d   :  { %v776_v22 = vpop.f32.mrb[16].mxu0 }
 0x94e   :  { %v782_v24 = vadd.f32 %v776_v22, %v468_v56  ;;  %v1122_v25 = vpop.f32.mrb[17].mxu0 }
 0x94f   :  { %v779_v50 = vpop.f32.mrb[18].mxu0 }
 0x950   :  { %1255 = vtanh.f32 %v782_v24  ;;  %v1123_v27 = vpop.f32.mrb[19].mxu0 }
 0x95a   :  { %v1256_v51 = vpop.eup %1255 }
 0x95b   :  { %v784_v52 = vpack.c.bf16 %v1256_v51, %v1256_v51 }
 0x95d   :  { %1141 = vmatmul.mubr.bf16.vlgmr.msra.gmra.mrb[12].mxu1 %v784_v52 }
 0xa30   :  { %v819_v31 = vpop.f32.mrb[12].mxu1 }
 0xa31   :  { %v825_v34 = vadd.f32 %v819_v31, %v473_v28  ;;  %v1142_v57 = vpop.f32.mrb[13].mxu1 }
 0xa32   :  { %v822_v4 = vpop.f32.mrb[14].mxu1 }
 0xa33   :  { %1257 = vtanh.f32 %v825_v34  ;;  %v1143_v32 = vpop.f32.mrb[15].mxu1 }
 0xa3d   :  { %v1258_v53 = vpop.eup %1257 }
 0xa3e   :  { %v827_v54 = vpack.c.bf16 %v1258_v53, %v1258_v53 }
 0xa40   :  { %1161 = vmatmul.mubr.bf16.vlgmr.msra.gmra.mrb[20].mxu0 %v827_v54 }
 0xb13   :  { %v862_v1 = vpop.f32.mrb[20].mxu0 }
 0xb14   :  { %v868_v55 = vadd.f32 %v862_v1, %v476_v35  ;;  %v1162_v59 = vpop.f32.mrb[21].mxu0 }
 0xb15   :  { %v865_v58 = vpop.f32.mrb[22].mxu0 }
 0xb16   :  { %1259 = vtanh.f32 %v868_v55  ;;  %v1163_v12 = vpop.f32.mrb[23].mxu0 }
 0xb20   :  { %v1260_v11 = vpop.eup %1259 }
 0xb21   :  { %v877_v16 = vmul.f32 %v1260_v11, %v915_v60 }
 0xb23   :  { %878 = vadd.xlane.f32.xlu1 %v877_v16 }
 0xbb0   :  { %v879_v20 = vpop.xlane.xlu1 %878 }
 0xbb1   :  { %v887_v23 = vadd.f32 %v916_v14, %v879_v20 }
 0xbb3   :  { %v888_v26 = vmax.f32 %v887_v23, 0.0 }
 0xbb5   :  { %891 = vperm.xlu0 %1220, %v888_v26  }
 0xc34   :  { %v892_v61 = vpop.permute.xlu0 %891 }
 0xc35   :  { %894 = vst [vmem:[%s1723_s9] sm:$0xff] %v892_v61 }
 0xc36   :  { %899 = vsyncpa [#allocation4], 1 }

</bundles_post_ra>
